<compile_context>
chip_gen: v5e
topology: v5e:2x2
jax: 0.10.0
libtpu: 0.0.40
codegen_flags: <defaults>
</compile_context>

<pallas_src>
import jax
import jax.numpy as jnp
import numpy as np
from jax.experimental import pallas as pl
from jax.experimental.pallas import tpu as pltpu  # noqa: F401

# ---------------- config (small shapes consistent with the module) -------------
BS = 2          # batch size
R_NUM = 4       # reviews per user/item
R_LEN = 16      # words per review
DOC_LEN = 20    # words per doc
WORD_DIM = 32   # opt.word_dim
ID_EMB = 32     # opt.id_emb_size
FILTERS = 64    # opt.filters_num
KSIZE = 3       # opt.kernel_size
VOCAB = 100     # opt.vocab_size
USER_NUM = 10   # opt.user_num
ITEM_NUM = 12   # opt.item_num
SENT_DIM = 3    # sentiments feature dim (only [:, :, 0] is used)

LP_R = R_LEN - KSIZE + 1              # 14 valid conv positions per review
LP_D = DOC_LEN - KSIZE + 1            # 18 valid conv positions per doc
DOC_BLK = ((DOC_LEN + 7) // 8) * 8    # 24: doc tokens padded to an aligned block
N_REV_ROWS = BS * R_NUM * R_LEN       # 128 review token rows
N_TOK = N_REV_ROWS + BS * DOC_BLK     # 176 conv output rows
TOK_OFF = 16                          # token slab starts 8-aligned after uid/id rows
N_GATHER = TOK_OFF + N_TOK + (KSIZE - 1)   # 194 gather rows total
TAB_ROWS = 128                        # words(100)+ids(10)+uid@w_id(12)+pad(6)
ID_OFF = VOCAB                        # id rows start at 100 in the combined table
UID_OFF = VOCAB + USER_NUM            # uid rows start at 110

# Pooling validity mask: 1.0 on valid conv positions, 0.0 on cross-boundary /
# pad positions.  Safe because the pooled values are post-ReLU (>= 0).
_POOL_MASK_NP = np.concatenate([
    np.tile((np.arange(R_LEN) < LP_R).astype(np.float32), BS * R_NUM),
    np.tile((np.arange(DOC_BLK) < LP_D).astype(np.float32), BS),
]).reshape(N_TOK, 1)


# ---------------- single fused kernel -------------------------------------------
def _fused_net_kernel(gidx_ref, pol_ref, mask_ref,
                      table_ref, w_conv_ref, b_conv_ref,
                      w_mix_ref, b_mix_ref, w_heads_ref, b_heads_ref,
                      out_ref):
    f32 = jnp.float32

    # --- ONE one-hot MXU gather for uid@w_id rows, id rows and all conv tokens --
    idx = gidx_ref[...]                                            # (194, 1) int32
    onehot = (idx == jax.lax.broadcasted_iota(
        jnp.int32, (N_GATHER, TAB_ROWS), 1)).astype(f32)           # (194, 128)
    emb = jnp.dot(onehot, table_ref[...], preferred_element_type=f32)   # (194, 32)

    uid_t = jnp.maximum(emb[0:BS * R_NUM, :], 0.0)        # relu(id_linear(uid)) (8,32)
    id_emb = emb[BS * R_NUM:BS * R_NUM + BS, :]           # raw id embedding     (2,32)

    # --- im2col conv: one (176, 96) x (96, 64) MXU push -------------------------
    x = jnp.concatenate([emb[TOK_OFF:TOK_OFF + N_TOK, :],
                         emb[TOK_OFF + 1:TOK_OFF + 1 + N_TOK, :],
                         emb[TOK_OFF + 2:TOK_OFF + 2 + N_TOK, :]], axis=1)  # (176,96)
    acc = jnp.dot(x, w_conv_ref[...], preferred_element_type=f32)          # (176,64)
    h = jnp.maximum(acc + b_conv_ref[...], 0.0) * mask_ref[...]            # (176,64)

    # --- max-pooling: two vectorized group reductions (tile-aligned reshapes) ---
    fea = jnp.max(h[0:N_REV_ROWS, :].reshape(BS * R_NUM, R_LEN, FILTERS),
                  axis=1)                                                   # (8, 64)
    docp = jnp.max(h[N_REV_ROWS:N_TOK, :].reshape(BS, DOC_BLK, FILTERS),
                   axis=1)                                                  # (2, 64)

    # --- mix_layer + folded attention column: one (8,96)x(96,65) matmul ---------
    # rs_mix = relu(cat([fea, uid_t])) == [fea | uid_t] since both halves >= 0.
    xm = jnp.concatenate([fea, uid_t], axis=1)                              # (8, 96)
    z = jnp.dot(xm, w_mix_ref[...], preferred_element_type=f32) + b_mix_ref[...]
    f2 = jnp.maximum(z[:, 0:FILTERS], 0.0)                 # mix_layer output (8,64)
    att = z[:, FILTERS:FILTERS + 1]                        # attention logits (8,1)

    # --- attention + sentiment softmax (vectorized), weighted sum on the MXU ----
    # softmax is shift-invariant; logits are bounded, so no max-subtraction.
    sp = jnp.concatenate([att, pol_ref[...]], axis=1)      # (8, 2) [att | pol/1e4]
    e = jnp.exp(sp)                                        # EUP
    j = jax.lax.broadcasted_iota(jnp.int32, (BS, BS * R_NUM), 1)
    b = jax.lax.broadcasted_iota(jnp.int32, (BS, BS * R_NUM), 0) * R_NUM
    bm = jnp.logical_and(j >= b, j < b + R_NUM).astype(f32)     # (2, 8) block mask
    s = jnp.dot(bm, e, preferred_element_type=f32)              # per-batch sums (2,2)
    rw = e[:, 0:1] * e[:, 1:2]                                  # per-row weight num.
    rpre = jnp.dot(bm, f2 * rw, preferred_element_type=f32)     # (2, 64)
    inv = pl.reciprocal(s[:, 0:1] * s[:, 1:2], approx=False)    # (2, 1)
    r_fea = rpre * (inv * float(R_NUM))                         # (2, 64)
    # nn.Dropout: eval mode -> identity

    # --- doc_linear + fc_layer via one block-diagonal matmul, single store ------
    hx = jnp.concatenate([docp, r_fea], axis=1)                 # (2, 128)
    heads = jnp.maximum(
        jnp.dot(hx, w_heads_ref[...], preferred_element_type=f32)
        + b_heads_ref[...], 0.0)                                # (2,64)=[doc|fc]
    out_ref[...] = jnp.concatenate([jnp.maximum(id_emb, 0.0), heads], axis=1)


# ---------------- forward pass (index/weight plumbing in JAX, compute in Pallas) -
@jax.jit
def net_forward(params, doc, reviews, ids, ids_list, sentiments):
    hp = 'highest'

    # Fold attention_linear(linear(.)) into one extra output column of mix_layer.
    wa = jnp.dot(params['w_lin'], params['w_att'][0], precision=hp)          # (96,)
    b_att_f = (jnp.dot(params['b_lin'][0], params['w_att'][0], precision=hp)
               + params['b_att'][0, 0])
    w_mixf = jnp.concatenate([params['w_mix'], wa[:, None]], axis=1)         # (96,65)
    b_mixf = jnp.concatenate([params['b_mix'], b_att_f.reshape(1, 1)], axis=1)

    # Combined 128-row gather table: [word_embs | id_emb | u_i_id_emb @ w_id | 0].
    tab_uw = jnp.dot(params['u_i_id_embedding'], params['w_id'], precision=hp)
    table = jnp.concatenate(
        [params['word_embs'], params['id_embedding'], tab_uw,
         jnp.zeros((TAB_ROWS - VOCAB - USER_NUM - ITEM_NUM, WORD_DIM),
                   jnp.float32)], axis=0)                                    # (128,32)

    # im2col conv weight and block-diagonal head weight.
    w_conv_flat = params['w_conv'].reshape(KSIZE * WORD_DIM, FILTERS)        # (96,64)
    zblk = jnp.zeros((FILTERS, ID_EMB), jnp.float32)
    w_heads = jnp.concatenate(
        [jnp.concatenate([params['w_doc'], zblk], axis=1),
         jnp.concatenate([zblk, params['w_fc']], axis=1)], axis=0)           # (128,64)
    b_heads = jnp.concatenate([params['b_doc'], params['b_fc']], axis=1)     # (1,64)

    # One gather-index slab: [uid(8) | id(2) | pad(6) | review toks(128) |
    #                         doc toks 2x24 (0-padded) | k-1 tail pads].
    doc_pad = jnp.pad(doc, ((0, 0), (0, DOC_BLK - DOC_LEN)))
    gidx = jnp.concatenate([
        ids_list.reshape(-1).astype(jnp.int32) + UID_OFF,
        ids.reshape(-1).astype(jnp.int32) + ID_OFF,
        jnp.zeros((TOK_OFF - BS * R_NUM - BS,), jnp.int32),
        reviews.reshape(-1).astype(jnp.int32),
        doc_pad.reshape(-1).astype(jnp.int32),
        jnp.zeros((KSIZE - 1,), jnp.int32),
    ]).reshape(N_GATHER, 1)

    pol = (sentiments[:, :, 0] / 10000.0).reshape(BS * R_NUM, 1).astype(jnp.float32)
    mask = jnp.asarray(_POOL_MASK_NP)

    out = pl.pallas_call(
        _fused_net_kernel,
        out_shape=jax.ShapeDtypeStruct((BS, 3 * ID_EMB), jnp.float32),
    )(gidx, pol, mask, table, w_conv_flat, params['b_conv'],
      w_mixf, b_mixf, w_heads, b_heads)
    return out.reshape(BS, 3, ID_EMB)


# ---------------- parameters (deterministic synthetic init) ---------------------
def init_params(key):
    keys = jax.random.split(key, 10)
    unif = lambda k, shape: jax.random.uniform(k, shape, jnp.float32, -0.1, 0.1)

    def xavier(k, shape, fan_in, fan_out):
        std = (2.0 / (fan_in + fan_out)) ** 0.5
        return std * jax.random.normal(k, shape, jnp.float32)

    return dict(
        word_embs=xavier(keys[0], (VOCAB, WORD_DIM), VOCAB, WORD_DIM),
        id_embedding=unif(keys[1], (USER_NUM, ID_EMB)),
        u_i_id_embedding=unif(keys[2], (ITEM_NUM, ID_EMB)),
        w_conv=xavier(keys[3], (KSIZE, WORD_DIM, FILTERS), KSIZE * WORD_DIM, FILTERS),
        b_conv=jnp.full((1, FILTERS), 0.1, jnp.float32),
        w_id=unif(keys[4], (ID_EMB, ID_EMB)),                       # id_linear (no bias)
        w_lin=unif(keys[5], (FILTERS + ID_EMB, ID_EMB)),            # linear
        b_lin=jnp.full((1, ID_EMB), 0.1, jnp.float32),
        w_mix=unif(keys[6], (FILTERS + ID_EMB, FILTERS)),           # mix_layer
        b_mix=jnp.full((1, FILTERS), 0.1, jnp.float32),
        w_att=unif(keys[7], (1, ID_EMB)),                           # attention_linear
        b_att=jnp.full((1, 1), 0.1, jnp.float32),
        w_doc=unif(keys[8], (FILTERS, ID_EMB)),                     # doc_linear
        b_doc=jnp.full((1, ID_EMB), 0.1, jnp.float32),
        w_fc=unif(keys[9], (FILTERS, ID_EMB)),                      # fc_layer
        b_fc=jnp.full((1, ID_EMB), 0.1, jnp.float32),
    )


# ---------------- pure-JAX reference (for correctness check) --------------------
def reference_forward(params, doc, reviews, ids, ids_list, sentiments):
    hp = 'highest'

    def conv_pool(x):
        n, L, wd = x.shape
        lp = L - KSIZE + 1
        acc = jnp.zeros((n, lp, FILTERS), jnp.float32)
        for j in range(KSIZE):
            acc = acc + jnp.einsum('nld,df->nlf', x[:, j:j + lp, :],
                                   params['w_conv'][j], precision=hp)
        acc = jnp.maximum(acc + params['b_conv'][0], 0.0)
        return jnp.max(acc, axis=1)

    bs, r_num, r_len = reviews.shape
    rev_emb = params['word_embs'][reviews].reshape(bs * r_num, r_len, WORD_DIM)
    fea = conv_pool(rev_emb).reshape(bs, r_num, FILTERS)
    id_emb = params['id_embedding'][ids]
    uid = params['u_i_id_embedding'][ids_list]
    uid_t = jnp.maximum(jnp.matmul(uid, params['w_id'], precision=hp), 0.0)
    rs_mix = jnp.maximum(jnp.concatenate([fea, uid_t], axis=2), 0.0)
    f2 = jnp.maximum(jnp.matmul(rs_mix, params['w_mix'], precision=hp)
                     + params['b_mix'][0], 0.0)
    rs_lin = jnp.matmul(rs_mix, params['w_lin'], precision=hp) + params['b_lin'][0]
    att = jnp.sum(rs_lin * params['w_att'][0], axis=2, keepdims=True) + params['b_att'][0, 0]
    att_w = jax.nn.softmax(att, axis=1)
    r_fea = f2 * att_w * r_num
    pol_w = jax.nn.softmax(sentiments[:, :, 0:1] / 10000.0, axis=1)
    r_fea = (r_fea * pol_w).sum(axis=1)
    doc_pool = conv_pool(params['word_embs'][doc])
    doc_fea = jnp.maximum(jnp.matmul(doc_pool, params['w_doc'], precision=hp)
                          + params['b_doc'][0], 0.0)
    fc_fea = jnp.maximum(jnp.matmul(r_fea, params['w_fc'], precision=hp)
                         + params['b_fc'][0], 0.0)
    return jnp.stack([jnp.maximum(id_emb, 0.0), doc_fea, fc_fea], axis=1)


if __name__ == "__main__":
    key = jax.random.PRNGKey(0)
    pkey, k1, k2, k3, k4, k5 = jax.random.split(key, 6)
    params = init_params(pkey)

    doc = jax.random.randint(k1, (BS, DOC_LEN), 0, VOCAB, jnp.int32)
    reviews = jax.random.randint(k2, (BS, R_NUM, R_LEN), 0, VOCAB, jnp.int32)
    ids = jax.random.randint(k3, (BS,), 0, USER_NUM, jnp.int32)
    ids_list = jax.random.randint(k4, (BS, R_NUM), 0, ITEM_NUM, jnp.int32)
    sentiments = jax.random.uniform(k5, (BS, R_NUM, SENT_DIM), jnp.float32,
                                    -1.0, 1.0) * 10000.0

    out = net_forward(params, doc, reviews, ids, ids_list, sentiments)
    out = jax.block_until_ready(out)
    assert out.shape == (BS, 3, ID_EMB)

    ref = reference_forward(params, doc, reviews, ids, ids_list, sentiments)
    # tightened vs. the previous 2e-3 (exact reciprocal, highest-precision ref)
    np.testing.assert_allclose(np.asarray(out), np.asarray(ref), rtol=5e-4, atol=5e-4)

    print("KERNEL_OK")
</pallas_src>

<mosaic_0001>
module attributes {stable_mosaic.version = 11 : i64} {
  func.func @_fused_net_kernel(%arg0: memref<194x1xi32, #tpu.memory_space<vmem>>, %arg1: memref<8x1xf32, #tpu.memory_space<vmem>>, %arg2: memref<176x1xf32, #tpu.memory_space<vmem>>, %arg3: memref<128x32xf32, #tpu.memory_space<vmem>>, %arg4: memref<96x64xf32, #tpu.memory_space<vmem>>, %arg5: memref<1x64xf32, #tpu.memory_space<vmem>>, %arg6: memref<96x65xf32, #tpu.memory_space<vmem>>, %arg7: memref<1x65xf32, #tpu.memory_space<vmem>>, %arg8: memref<128x64xf32, #tpu.memory_space<vmem>>, %arg9: memref<1x64xf32, #tpu.memory_space<vmem>>, %arg10: memref<2x96xf32, #tpu.memory_space<vmem>>) attributes {dimension_semantics = [], scalar_prefetch = 0 : i64, scratch_operands = 0 : i64, tpu.core_type = #tpu.core_type<tc>} {
    %c0 = arith.constant 0 : index
    %c0_0 = arith.constant 0 : index
    %0 = vector.load %arg0[%c0, %c0_0] : memref<194x1xi32, #tpu.memory_space<vmem>>, vector<194x1xi32>
    %1 = tpu.iota {dimensions = array<i32: 1>} : vector<194x128xi32>
    %2 = vector.broadcast %0 : vector<194x1xi32> to vector<194x128xi32>
    %3 = arith.cmpi eq, %2, %1 : vector<194x128xi32>
    %4 = arith.extui %3 : vector<194x128xi1> to vector<194x128xi32>
    %5 = arith.sitofp %4 : vector<194x128xi32> to vector<194x128xf32>
    %c0_1 = arith.constant 0 : index
    %c0_2 = arith.constant 0 : index
    %6 = vector.load %arg3[%c0_1, %c0_2] : memref<128x32xf32, #tpu.memory_space<vmem>>, vector<128x32xf32>
    %cst = arith.constant dense<0.000000e+00> : vector<194x32xf32>
    %7 = tpu.matmul %5, %6, %cst {dimension_numbers = #tpu.dot_dimension_numbers<[1], [0], [0], [1], [0, 0, 1, 1], [], []>} : vector<194x128xf32>, vector<128x32xf32>, vector<194x32xf32> -> vector<194x32xf32>
    %8 = vector.extract_strided_slice %7 {offsets = [0, 0], sizes = [8, 32], strides = [1, 1]} : vector<194x32xf32> to vector<8x32xf32>
    %cst_3 = arith.constant 0.000000e+00 : f32
    %9 = vector.broadcast %cst_3 : f32 to vector<8x32xf32>
    %10 = arith.maximumf %8, %9 : vector<8x32xf32>
    %11 = vector.extract_strided_slice %7 {offsets = [8, 0], sizes = [2, 32], strides = [1, 1]} : vector<194x32xf32> to vector<2x32xf32>
    %12 = vector.extract_strided_slice %7 {offsets = [16, 0], sizes = [176, 32], strides = [1, 1]} : vector<194x32xf32> to vector<176x32xf32>
    %13 = vector.extract_strided_slice %7 {offsets = [17, 0], sizes = [176, 32], strides = [1, 1]} : vector<194x32xf32> to vector<176x32xf32>
    %14 = vector.extract_strided_slice %7 {offsets = [18, 0], sizes = [176, 32], strides = [1, 1]} : vector<194x32xf32> to vector<176x32xf32>
    %15 = tpu.concatenate %12, %13, %14 in 1 : vector<176x32xf32>, vector<176x32xf32>, vector<176x32xf32> -> vector<176x96xf32>
    %c0_4 = arith.constant 0 : index
    %c0_5 = arith.constant 0 : index
    %16 = vector.load %arg4[%c0_4, %c0_5] : memref<96x64xf32, #tpu.memory_space<vmem>>, vector<96x64xf32>
    %cst_6 = arith.constant dense<0.000000e+00> : vector<176x64xf32>
    %17 = tpu.matmul %15, %16, %cst_6 {dimension_numbers = #tpu.dot_dimension_numbers<[1], [0], [0], [1], [0, 0, 1, 1], [], []>} : vector<176x96xf32>, vector<96x64xf32>, vector<176x64xf32> -> vector<176x64xf32>
    %c0_7 = arith.constant 0 : index
    %c0_8 = arith.constant 0 : index
    %18 = vector.load %arg5[%c0_7, %c0_8] : memref<1x64xf32, #tpu.memory_space<vmem>>, vector<1x64xf32>
    %19 = vector.broadcast %18 : vector<1x64xf32> to vector<176x64xf32>
    %20 = arith.addf %17, %19 : vector<176x64xf32>
    %cst_9 = arith.constant 0.000000e+00 : f32
    %21 = vector.broadcast %cst_9 : f32 to vector<176x64xf32>
    %22 = arith.maximumf %20, %21 : vector<176x64xf32>
    %c0_10 = arith.constant 0 : index
    %c0_11 = arith.constant 0 : index
    %23 = vector.load %arg2[%c0_10, %c0_11] : memref<176x1xf32, #tpu.memory_space<vmem>>, vector<176x1xf32>
    %24 = vector.broadcast %23 : vector<176x1xf32> to vector<176x64xf32>
    %25 = arith.mulf %22, %24 : vector<176x64xf32>
    %26 = vector.extract_strided_slice %25 {offsets = [0, 0], sizes = [128, 64], strides = [1, 1]} : vector<176x64xf32> to vector<128x64xf32>
    %27 = vector.shape_cast %26 : vector<128x64xf32> to vector<8x16x64xf32>
    %cst_12 = arith.constant dense<0xFF800000> : vector<8x64xf32>
    %28 = vector.multi_reduction <maximumf>, %27, %cst_12 [1] : vector<8x16x64xf32> to vector<8x64xf32>
    %29 = vector.extract_strided_slice %25 {offsets = [128, 0], sizes = [48, 64], strides = [1, 1]} : vector<176x64xf32> to vector<48x64xf32>
    %30 = vector.shape_cast %29 : vector<48x64xf32> to vector<2x24x64xf32>
    %cst_13 = arith.constant dense<0xFF800000> : vector<2x64xf32>
    %31 = vector.multi_reduction <maximumf>, %30, %cst_13 [1] : vector<2x24x64xf32> to vector<2x64xf32>
    %32 = tpu.concatenate %28, %10 in 1 : vector<8x64xf32>, vector<8x32xf32> -> vector<8x96xf32>
    %c0_14 = arith.constant 0 : index
    %c0_15 = arith.constant 0 : index
    %33 = vector.load %arg6[%c0_14, %c0_15] : memref<96x65xf32, #tpu.memory_space<vmem>>, vector<96x65xf32>
    %cst_16 = arith.constant dense<0.000000e+00> : vector<8x65xf32>
    %34 = tpu.matmul %32, %33, %cst_16 {dimension_numbers = #tpu.dot_dimension_numbers<[1], [0], [0], [1], [0, 0, 1, 1], [], []>} : vector<8x96xf32>, vector<96x65xf32>, vector<8x65xf32> -> vector<8x65xf32>
    %c0_17 = arith.constant 0 : index
    %c0_18 = arith.constant 0 : index
    %35 = vector.load %arg7[%c0_17, %c0_18] : memref<1x65xf32, #tpu.memory_space<vmem>>, vector<1x65xf32>
    %36 = vector.broadcast %35 : vector<1x65xf32> to vector<8x65xf32>
    %37 = arith.addf %34, %36 : vector<8x65xf32>
    %38 = vector.extract_strided_slice %37 {offsets = [0, 0], sizes = [8, 64], strides = [1, 1]} : vector<8x65xf32> to vector<8x64xf32>
    %cst_19 = arith.constant 0.000000e+00 : f32
    %39 = vector.broadcast %cst_19 : f32 to vector<8x64xf32>
    %40 = arith.maximumf %38, %39 : vector<8x64xf32>
    %41 = vector.extract_strided_slice %37 {offsets = [0, 64], sizes = [8, 1], strides = [1, 1]} : vector<8x65xf32> to vector<8x1xf32>
    %c0_20 = arith.constant 0 : index
    %c0_21 = arith.constant 0 : index
    %42 = vector.load %arg1[%c0_20, %c0_21] : memref<8x1xf32, #tpu.memory_space<vmem>>, vector<8x1xf32>
    %43 = tpu.concatenate %41, %42 in 1 : vector<8x1xf32>, vector<8x1xf32> -> vector<8x2xf32>
    %44 = math.exp %43 : vector<8x2xf32>
    %45 = tpu.iota {dimensions = array<i32: 1>} : vector<2x8xi32>
    %46 = tpu.iota {dimensions = array<i32: 0>} : vector<2x8xi32>
    %c4_i32 = arith.constant 4 : i32
    %47 = vector.broadcast %c4_i32 : i32 to vector<2x8xi32>
    %48 = arith.muli %46, %47 : vector<2x8xi32>
    %49 = arith.cmpi sge, %45, %48 : vector<2x8xi32>
    %c4_i32_22 = arith.constant 4 : i32
    %50 = vector.broadcast %c4_i32_22 : i32 to vector<2x8xi32>
    %51 = arith.addi %48, %50 : vector<2x8xi32>
    %52 = arith.cmpi slt, %45, %51 : vector<2x8xi32>
    %53 = arith.andi %49, %52 : vector<2x8xi1>
    %54 = arith.extui %53 : vector<2x8xi1> to vector<2x8xi32>
    %55 = arith.sitofp %54 : vector<2x8xi32> to vector<2x8xf32>
    %cst_23 = arith.constant dense<0.000000e+00> : vector<2x2xf32>
    %56 = tpu.matmul %55, %44, %cst_23 {dimension_numbers = #tpu.dot_dimension_numbers<[1], [0], [0], [1], [0, 0, 1, 1], [], []>} : vector<2x8xf32>, vector<8x2xf32>, vector<2x2xf32> -> vector<2x2xf32>
    %57 = vector.extract_strided_slice %44 {offsets = [0, 0], sizes = [8, 1], strides = [1, 1]} : vector<8x2xf32> to vector<8x1xf32>
    %58 = vector.extract_strided_slice %44 {offsets = [0, 1], sizes = [8, 1], strides = [1, 1]} : vector<8x2xf32> to vector<8x1xf32>
    %59 = arith.mulf %57, %58 : vector<8x1xf32>
    %60 = vector.broadcast %59 : vector<8x1xf32> to vector<8x64xf32>
    %61 = arith.mulf %40, %60 : vector<8x64xf32>
    %cst_24 = arith.constant dense<0.000000e+00> : vector<2x64xf32>
    %62 = tpu.matmul %55, %61, %cst_24 {dimension_numbers = #tpu.dot_dimension_numbers<[1], [0], [0], [1], [0, 0, 1, 1], [], []>} : vector<2x8xf32>, vector<8x64xf32>, vector<2x64xf32> -> vector<2x64xf32>
    %63 = vector.extract_strided_slice %56 {offsets = [0, 0], sizes = [2, 1], strides = [1, 1]} : vector<2x2xf32> to vector<2x1xf32>
    %64 = vector.extract_strided_slice %56 {offsets = [0, 1], sizes = [2, 1], strides = [1, 1]} : vector<2x2xf32> to vector<2x1xf32>
    %65 = arith.mulf %63, %64 : vector<2x1xf32>
    %66 = tpu.reciprocal %65 : vector<2x1xf32> -> vector<2x1xf32>
    %cst_25 = arith.constant 4.000000e+00 : f32
    %67 = vector.broadcast %cst_25 : f32 to vector<2x1xf32>
    %68 = arith.mulf %66, %67 : vector<2x1xf32>
    %69 = vector.broadcast %68 : vector<2x1xf32> to vector<2x64xf32>
    %70 = arith.mulf %62, %69 : vector<2x64xf32>
    %71 = tpu.concatenate %31, %70 in 1 : vector<2x64xf32>, vector<2x64xf32> -> vector<2x128xf32>
    %c0_26 = arith.constant 0 : index
    %c0_27 = arith.constant 0 : index
    %72 = vector.load %arg8[%c0_26, %c0_27] : memref<128x64xf32, #tpu.memory_space<vmem>>, vector<128x64xf32>
    %cst_28 = arith.constant dense<0.000000e+00> : vector<2x64xf32>
    %73 = tpu.matmul %71, %72, %cst_28 {dimension_numbers = #tpu.dot_dimension_numbers<[1], [0], [0], [1], [0, 0, 1, 1], [], []>} : vector<2x128xf32>, vector<128x64xf32>, vector<2x64xf32> -> vector<2x64xf32>
    %c0_29 = arith.constant 0 : index
    %c0_30 = arith.constant 0 : index
    %74 = vector.load %arg9[%c0_29, %c0_30] : memref<1x64xf32, #tpu.memory_space<vmem>>, vector<1x64xf32>
    %75 = vector.broadcast %74 : vector<1x64xf32> to vector<2x64xf32>
    %76 = arith.addf %73, %75 : vector<2x64xf32>
    %cst_31 = arith.constant 0.000000e+00 : f32
    %77 = vector.broadcast %cst_31 : f32 to vector<2x64xf32>
    %78 = arith.maximumf %76, %77 : vector<2x64xf32>
    %cst_32 = arith.constant 0.000000e+00 : f32
    %79 = vector.broadcast %cst_32 : f32 to vector<2x32xf32>
    %80 = arith.maximumf %11, %79 : vector<2x32xf32>
    %81 = tpu.concatenate %80, %78 in 1 : vector<2x32xf32>, vector<2x64xf32> -> vector<2x96xf32>
    %c0_33 = arith.constant 0 : index
    %c0_34 = arith.constant 0 : index
    %82 = vector.load %arg10[%c0_33, %c0_34] : memref<2x96xf32, #tpu.memory_space<vmem>>, vector<2x96xf32>
    tpu.vector_store %arg10[%c0_33, %c0_34], %81 {strides = array<i32>} : memref<2x96xf32, #tpu.memory_space<vmem>>, vector<2x96xf32>,
    return
  }
}

</mosaic_0001>

<bundles_post_ra>
// kernel: net_forward.1
= control target key start
LH: loop header
LB: loop body
LE: loop exit
PB: predicated region body
PF: predicated region fallthrough
CT: control target
= control target key end

     0   :  { %v1404_v0 = vmov 0   ;;  %v60_v36 = vlaneseq  ;;  %v1405_v41 = vmov 1.0   ;;  %s1407_s23 = smov 32   ;;  %s1408_s15 = smov 1   ;;  %s2197_s0 = inlined_call_operand.vmem [shape: s32[194,1], index: 0, kind: input, shape index: {}]   ;;  %s2198_s3 = inlined_call_operand.vmem [shape: f32[128,32], index: 3, kind: input, shape index: {}]   ;;  %s2199_s4 = inlined_call_operand.vmem [shape: f32[96,64], index: 4, kind: input, shape index: {}]   ;;  %s2200_s5 = inlined_call_operand.vmem [shape: f32[1,64], index: 5, kind: input, shape index: {}]   ;;  %s2201_s2 = inlined_call_operand.vmem [shape: f32[176,1], index: 2, kind: input, shape index: {}]   ;;  %s2202_s6 = inlined_call_operand.vmem [shape: f32[96,65], index: 6, kind: input, shape index: {}]   ;;  %s2203_s7 = inlined_call_operand.vmem [shape: f32[1,65], index: 7, kind: input, shape index: {}]   ;;  %s2204_s1 = inlined_call_operand.vmem [shape: f32[8,1], index: 1, kind: input, shape index: {}]   ;;  %s2205_s9 = inlined_call_operand.vmem [shape: f32[1,64], index: 9, kind: input, shape index: {}]   ;;  %s2206_s8 = inlined_call_operand.vmem [shape: f32[128,64], index: 8, kind: input, shape index: {}]   ;;  %s2207_s10 = inlined_call_operand.vmem [shape: f32[2,96], index: 10, kind: output, shape index: {}]  }
   0x1   :  { %1395 = vset.pattern.permute.xlu1 %v1404_v0  ;;  %1394 = vset.pattern.permute.xlu0 %v1404_v0  ;;  %v37_v1 = vld [vmem:[%s2197_s0 + $0x10] sm:$0xff]  ;;  %v35_v2 = vld [vmem:[%s2197_s0] sm:$0xff]  ;;  %v38_v4 = vld [vmem:[%s2197_s0 + $0x18] sm:$0xff] }
   0x2   :  { %69 = vperm.xlu1 %1395, %v37_v1   ;;  %63 = vperm.xlu0 %1394, %v35_v2   ;;  %v39_v3 = vld [vmem:[%s2197_s0 + $0x20] sm:$0xff]  ;;  %v36_v5 = vld [vmem:[%s2197_s0 + $0x8] sm:$0xff]  ;;  %v42_v7 = vld [vmem:[%s2197_s0 + $0x38] sm:$0xff]  ;;  %v1572_v37 = vand.u32 127, %v60_v36 }
   0x3   :  { %1396 = vset.pattern.permute.xlu2 %v1404_v0  ;;  %v40_v6 = vld [vmem:[%s2197_s0 + $0x28] sm:$0xff]  ;;  %v41_v8 = vld [vmem:[%s2197_s0 + $0x30] sm:$0xff]  ;;  %v43_v9 = vld [vmem:[%s2197_s0 + $0x40] sm:$0xff] }
   0x4   :  { %75 = vperm.xlu2 %1396, %v39_v3   ;;  %v227_v10 = vld [vmem:[%s2198_s3 + $0x78] sm:$0xff]  ;;  %v226_v11 = vld [vmem:[%s2198_s3 + $0x70] sm:$0xff]  ;;  %v225_v12 = vld [vmem:[%s2198_s3 + $0x68] sm:$0xff] }
   0x5   :  { %228 = vmatpush.msra.mxu0 %v227_v10  ;;  %1359 = vmatpush.msra.mxu2 %v227_v10  ;;  %v224_v13 = vld [vmem:[%s2198_s3 + $0x60] sm:$0xff]  ;;  %v48_v14 = vld [vmem:[%s2197_s0 + $0x68] sm:$0xff]  ;;  %v223_v16 = vld [vmem:[%s2198_s3 + $0x58] sm:$0xff] }
   0x6   :  { %v44_v15 = vld [vmem:[%s2197_s0 + $0x48] sm:$0xff]  ;;  %v45_v17 = vld [vmem:[%s2197_s0 + $0x50] sm:$0xff]  ;;  %v220_v20 = vld [vmem:[%s2198_s3 + $0x40] sm:$0xff] }
   0x7   :  { %229 = vmatpush.msra.mxu0 %v226_v11  ;;  %1360 = vmatpush.msra.mxu2 %v226_v11  ;;  %v222_v18 = vld [vmem:[%s2198_s3 + $0x50] sm:$0xff]  ;;  %v221_v19 = vld [vmem:[%s2198_s3 + $0x48] sm:$0xff]  ;;  %v46_v21 = vld [vmem:[%s2197_s0 + $0x58] sm:$0xff] }
   0x8   :  { %v49_v22 = vld [vmem:[%s2197_s0 + $0x70] sm:$0xff]  ;;  %v219_v23 = vld [vmem:[%s2198_s3 + $0x38] sm:$0xff]  ;;  %v217_v26 = vld [vmem:[%s2198_s3 + $0x28] sm:$0xff] }
   0x9   :  { %230 = vmatpush.msra.mxu0 %v225_v12  ;;  %1361 = vmatpush.msra.mxu2 %v225_v12  ;;  %v50_v24 = vld [vmem:[%s2197_s0 + $0x78] sm:$0xff]  ;;  %v218_v25 = vld [vmem:[%s2198_s3 + $0x30] sm:$0xff]  ;;  %v51_v27 = vld [vmem:[%s2197_s0 + $0x80] sm:$0xff] }
   0xa   :  { %72 = vperm.xlu1 %1395, %v38_v4   ;;  %66 = vperm.xlu0 %1394, %v36_v5   ;;  %v47_v28 = vld [vmem:[%s2197_s0 + $0x60] sm:$0xff]  ;;  %v52_v29 = vld [vmem:[%s2197_s0 + $0x88] sm:$0xff]  ;;  %v53_v30 = vld [vmem:[%s2197_s0 + $0x90] sm:$0xff] }
   0xb   :  { %231 = vmatpush.msra.mxu0 %v224_v13  ;;  %1362 = vmatpush.msra.mxu2 %v224_v13  ;;  %v216_v31 = vld [vmem:[%s2198_s3 + $0x20] sm:$0xff]  ;;  %v215_v32 = vld [vmem:[%s2198_s3 + $0x18] sm:$0xff]  ;;  %v214_v33 = vld [vmem:[%s2198_s3 + $0x10] sm:$0xff] }
   0xc   :  { %78 = vperm.xlu2 %1396, %v40_v6   ;;  %v213_v34 = vld [vmem:[%s2198_s3 + $0x8] sm:$0xff]  ;;  %v212_v35 = vld [vmem:[%s2198_s3] sm:$0xff]  ;;  %s1406_s3 = smov 64  }
   0xd   :  { %232 = vmatpush.msra.mxu0 %v223_v16  ;;  %1363 = vmatpush.msra.mxu2 %v223_v16 }
   0xf   :  { %233 = vmatpush.msra.mxu0 %v222_v18  ;;  %1364 = vmatpush.msra.mxu2 %v222_v18 }
  0x11   :  { %234 = vmatpush.msra.mxu0 %v221_v19  ;;  %1365 = vmatpush.msra.mxu2 %v221_v19 }
  0x12   :  { %84 = vperm.xlu1 %1395, %v42_v7   ;;  %81 = vperm.xlu0 %1394, %v41_v8  }
  0x13   :  { %235 = vmatpush.msra.mxu0 %v220_v20  ;;  %1366 = vmatpush.msra.mxu2 %v220_v20 }
  0x14   :  { %87 = vperm.xlu2 %1396, %v43_v9  }
  0x15   :  { %236 = vmatpush.msra.mxu0 %v219_v23  ;;  %1367 = vmatpush.msra.mxu2 %v219_v23 }
  0x17   :  { %237 = vmatpush.msra.mxu0 %v218_v25  ;;  %1368 = vmatpush.msra.mxu2 %v218_v25 }
  0x19   :  { %238 = vmatpush.msra.mxu0 %v217_v26  ;;  %1369 = vmatpush.msra.mxu2 %v217_v26 }
  0x1a   :  { %102 = vperm.xlu1 %1395, %v48_v14   ;;  %90 = vperm.xlu0 %1394, %v44_v15  }
  0x1b   :  { %239 = vmatpush.msra.mxu0 %v216_v31  ;;  %1370 = vmatpush.msra.mxu2 %v216_v31 }
  0x1c   :  { %93 = vperm.xlu2 %1396, %v45_v17  }
  0x1d   :  { %240 = vmatpush.msra.mxu0 %v215_v32  ;;  %1371 = vmatpush.msra.mxu2 %v215_v32 }
  0x1f   :  { %241 = vmatpush.msra.mxu0 %v214_v33  ;;  %1372 = vmatpush.msra.mxu2 %v214_v33 }
  0x21   :  { %242 = vmatpush.msra.mxu0 %v213_v34  ;;  %1373 = vmatpush.msra.mxu2 %v213_v34 }
  0x22   :  { %96 = vperm.xlu1 %1395, %v46_v21   ;;  %105 = vperm.xlu0 %1394, %v49_v22  }
  0x23   :  { %243 = vmatpush.msra.mxu0 %v212_v35  ;;  %1374 = vmatpush.msra.mxu2 %v212_v35 }
  0x24   :  { %108 = vperm.xlu2 %1396, %v50_v24  }
  0x2a   :  { %111 = vperm.xlu1 %1395, %v51_v27   ;;  %99 = vperm.xlu0 %1394, %v47_v28  }
  0x2c   :  { %114 = vperm.xlu2 %1396, %v52_v29  }
  0x32   :  { %117 = vperm.xlu0 %1394, %v53_v30  }
  0x5e   :  { %v76_v38 = vpop.permute.xlu2 %75 }
  0x5f   :  { %vm141_vm5 = vcmp.eq.s32.totalorder %v76_v38, %v1572_v37 }
  0x66   :  { %v79_v44 = vpop.permute.xlu2 %78 }
  0x67   :  { %vm142_vm7 = vcmp.eq.s32.totalorder %v79_v44, %v1572_v37 }
  0x6e   :  { %v88_v47 = vpop.permute.xlu2 %87 }
  0x6f   :  { %vm145_vm13 = vcmp.eq.s32.totalorder %v88_v47, %v1572_v37 }
  0x74   :  { %v70_v39 = vpop.permute.xlu1 %69  ;;  %v64_v40 = vpop.permute.xlu0 %63 }
  0x75   :  { %vm137_vm0 = vcmp.eq.s32.totalorder %v64_v40, %v1572_v37  ;;  %vm139_vm2 = vcmp.eq.s32.totalorder %v70_v39, %v1572_v37 }
  0x76   :  { %1308 = vmatmul.msk.f32.vlgmr.msra.gmra.mxu0 %vm137_vm0, %v1405_v41  ;;  %v94_v50 = vpop.permute.xlu2 %93 }
  0x77   :  { %vm147_vm0 = vcmp.eq.s32.totalorder %v94_v50, %v1572_v37 }
  0x7c   :  { %v73_v42 = vpop.permute.xlu1 %72  ;;  %v67_v43 = vpop.permute.xlu0 %66 }
  0x7d   :  { %vm138_vm1 = vcmp.eq.s32.totalorder %v67_v43, %v1572_v37  ;;  %vm140_vm3 = vcmp.eq.s32.totalorder %v73_v42, %v1572_v37 }
  0x7e   :  { %1309 = vmatmul.msk.f32.gmra.mxu0 %vm138_vm1, %v1405_v41  ;;  %v109_v53 = vpop.permute.xlu2 %108 }
  0x7f   :  { %vm152_vm8 = vcmp.eq.s32.totalorder %v109_v53, %v1572_v37  ;;  %v622_v53 = vld [vmem:[%s2199_s4 + $0x40] sm:$0xff] }
  0x84   :  { %v85_v45 = vpop.permute.xlu1 %84  ;;  %v82_v46 = vpop.permute.xlu0 %81 }
  0x85   :  { %vm143_vm9 = vcmp.eq.s32.totalorder %v82_v46, %v1572_v37  ;;  %vm144_vm11 = vcmp.eq.s32.totalorder %v85_v45, %v1572_v37  ;;  %v625_v45 = vld [vmem:[%s2199_s4 + $0x58] sm:$0xff]  ;;  %v624_v46 = vld [vmem:[%s2199_s4 + $0x50] sm:$0xff] }
  0x86   :  { %1310 = vmatmul.msk.f32.gmra.mxu0 %vm139_vm2, %v1405_v41  ;;  %v115_v56 = vpop.permute.xlu2 %114  ;;  %701 = vmatpush.msra.mxu1 %v625_v45 }
  0x87   :  { %vm154_vm12 = vcmp.eq.s32.totalorder %v115_v56, %v1572_v37  ;;  %1375 = vmatpush.msra.mxu3 %v625_v45  ;;  %v54_v45 = vld [vmem:[%s2197_s0 + $0x98] sm:$0xff] }
  0x88   :  { %702 = vmatpush.msra.mxu1 %v624_v46 }
  0x89   :  { %1376 = vmatpush.msra.mxu3 %v624_v46 }
  0x8c   :  { %v103_v48 = vpop.permute.xlu1 %102  ;;  %v91_v49 = vpop.permute.xlu0 %90 }
  0x8d   :  { %vm150_vm4 = vcmp.eq.s32.totalorder %v103_v48, %v1572_v37  ;;  %vm146_vm15 = vcmp.eq.s32.totalorder %v91_v49, %v1572_v37 }
  0x8e   :  { %1311 = vmatmul.msk.f32.gmra.mxu0 %vm140_vm3, %v1405_v41  ;;  %1321 = vmatmul.msk.f32.vlgmr.msra.gmra.mxu2 %vm150_vm4, %v1405_v41  ;;  %vm456_vm3 = vcmask 1045504   ;;  %vm344_vm4 = vcmask 1046528  }
  0x94   :  { %v106_v51 = vpop.permute.xlu0 %105  ;;  %v97_v52 = vpop.permute.xlu1 %96 }
  0x95   :  { %vm151_vm6 = vcmp.eq.s32.totalorder %v106_v51, %v1572_v37  ;;  %vm148_vm1 = vcmp.eq.s32.totalorder %v97_v52, %v1572_v37  ;;  %v623_v52 = vld [vmem:[%s2199_s4 + $0x48] sm:$0xff] }
  0x96   :  { %1312 = vmatmul.msk.f32.gmra.mxu0 %vm141_vm5, %v1405_v41  ;;  %1322 = vmatmul.msk.f32.gmra.mxu2 %vm151_vm6, %v1405_v41  ;;  %vm591_vm5 = vcmask 523264   ;;  %vm568_vm6 = vcmask 261120  }
  0x97   :  { %703 = vmatpush.msra.mxu1 %v623_v52  ;;  %1377 = vmatpush.msra.mxu3 %v623_v52  ;;  %v55_v52 = vld [vmem:[%s2197_s0 + $0xa0] sm:$0xff] }
  0x99   :  { %704 = vmatpush.msra.mxu1 %v622_v53  ;;  %1378 = vmatpush.msra.mxu3 %v622_v53 }
  0x9c   :  { %v112_v54 = vpop.permute.xlu1 %111  ;;  %v100_v55 = vpop.permute.xlu0 %99 }
  0x9d   :  { %vm153_vm10 = vcmp.eq.s32.totalorder %v112_v54, %v1572_v37  ;;  %vm149_vm2 = vcmp.eq.s32.totalorder %v100_v55, %v1572_v37  ;;  %v621_v54 = vld [vmem:[%s2199_s4 + $0x38] sm:$0xff] }
  0x9e   :  { %1313 = vmatmul.msk.f32.gmra.mxu0 %vm142_vm7, %v1405_v41  ;;  %1323 = vmatmul.msk.f32.gmra.mxu2 %vm152_vm8, %v1405_v41  ;;  %vm630_vm7 = vcmask 785408  }
  0x9f   :  { %705 = vmatpush.msra.mxu1 %v621_v54  ;;  %1379 = vmatpush.msra.mxu3 %v621_v54 }
  0xa4   :  { %v118_v57 = vpop.permute.xlu0 %117 }
  0xa5   :  { %vm155_vm14 = vcmp.eq.s32.totalorder %v118_v57, %v1572_v37 }
  0xa6   :  { %1314 = vmatmul.msk.f32.gmra.mxu0 %vm143_vm9, %v1405_v41  ;;  %1324 = vmatmul.msk.f32.gmra.mxu2 %vm153_vm10, %v1405_v41 }
  0xae   :  { %1315 = vmatmul.msk.f32.gmra.mxu0 %vm144_vm11, %v1405_v41  ;;  %1325 = vmatmul.msk.f32.gmra.mxu2 %vm154_vm12, %v1405_v41 }
  0xb6   :  { %1316 = vmatmul.msk.f32.gmra.mxu0 %vm145_vm13, %v1405_v41  ;;  %1326 = vmatmul.msk.f32.gmra.mxu2 %vm155_vm14, %v1405_v41  ;;  %vm1058_vm14 = vcmask 1041409  }
  0xbe   :  { %1317 = vmatmul.msk.f32.gmra.mxu0 %vm146_vm15, %v1405_v41  ;;  %vm1060_vm15 = vcmask 1042434  }
  0xc6   :  { %1318 = vmatmul.msk.f32.gmra.mxu0 %vm147_vm0, %v1405_v41  ;;  %vm1062_vm0 = vcmask 1043459  }
  0xce   :  { %1319 = vmatmul.msk.f32.gmra.mxu0 %vm148_vm1, %v1405_v41  ;;  %vm1064_vm1 = vcmask 1044484  }
  0xd6   :  { %1320 = vmatmul.msk.f32.gmra.mxu0 %vm149_vm2, %v1405_v41  ;;  %vm1066_vm2 = vcmask 1045509  }
  0xf3   :  { %v1612_v58 = vpop.f32.mrf.mxu0 }
  0xfb   :  { %v1614_v59 = vpop.f32.mrf.mxu0 }
 0x103   :  { %v1616_v60 = vpop.f32.mrf.mxu0 }
 0x104   :  { %v345_v62 = vrot.slane %v1616_v60, 1  ;;  %v457_v63 = vrot.slane %v1616_v60, 2 }
 0x10b   :  { %v1618_v61 = vpop.f32.mrf.mxu0 }
 0x10c   :  { %v346_v0 = vrot.slane %v1618_v61, 1  ;;  %v458_v1 = vrot.slane %v1618_v61, 2 }
 0x10e   :  { %v459_v2 = vsel %vm456_vm3, %v457_v63, %v458_v1  ;;  %v347_v3 = vsel %vm344_vm4, %v345_v62, %v346_v0 }
 0x10f   :  { %502 = vrot.lane.b32.xlu2 %v459_v2, %s1406_s3  ;;  %390 = vrot.lane.b32.xlu1 %v347_v3, %s1407_s23 }
 0x111   :  { %v1664_v27 = vpop.f32.mrf.mxu2 }
 0x112   :  { %v366_v57 = vrot.slane %v1664_v27, 1 }
 0x113   :  { %v1628_v4 = vpop.f32.mrf.mxu0 }
 0x114   :  { %v348_v5 = vrot.slane %v1628_v4, 1  ;;  %v460_v6 = vrot.slane %v1628_v4, 2 }
 0x116   :  { %v461_v7 = vsel %vm456_vm3, %v458_v1, %v460_v6  ;;  %v349_v8 = vsel %vm344_vm4, %v346_v0, %v348_v5  ;;  %v620_v0 = vld [vmem:[%s2199_s4 + $0x30] sm:$0xff] }
 0x117   :  { %504 = vrot.lane.b32.xlu1 %v461_v7, %s1406_s3  ;;  %392 = vrot.lane.b32.xlu0 %v349_v8, %s1407_s23  ;;  %v618_v8 = vld [vmem:[%s2199_s4 + $0x20] sm:$0xff] }
 0x118   :  { %706 = vmatpush.msra.mxu1 %v620_v0  ;;  %1380 = vmatpush.msra.mxu3 %v620_v0  ;;  %v803_v0 = vld [vmem:[%s2201_s2 + $0x8] sm:$0xff] }
 0x119   :  { %v1676_v35 = vpop.f32.mrf.mxu2 }
 0x11a   :  { %v480_v7 = vrot.slane %v1676_v35, 2 }
 0x11b   :  { %v1636_v9 = vpop.f32.mrf.mxu0 }
 0x11c   :  { %v350_v10 = vrot.slane %v1636_v9, 1  ;;  %v462_v11 = vrot.slane %v1636_v9, 2 }
 0x11e   :  { %v463_v12 = vsel %vm456_vm3, %v460_v6, %v462_v11  ;;  %v351_v13 = vsel %vm344_vm4, %v348_v5, %v350_v10  ;;  %v619_v5 = vld [vmem:[%s2199_s4 + $0x28] sm:$0xff]  ;;  %v368_v6 = vrot.slane %v1676_v35, 1 }
 0x11f   :  { %506 = vrot.lane.b32.xlu0 %v463_v12, %s1406_s3  ;;  %394 = vrot.lane.b32.xlu2 %v351_v13, %s1407_s23  ;;  %v616_v13 = vld [vmem:[%s2199_s4 + $0x10] sm:$0xff] }
 0x120   :  { %707 = vmatpush.msra.mxu1 %v619_v5  ;;  %1381 = vmatpush.msra.mxu3 %v619_v5 }
 0x121   :  { %v1688_v44 = vpop.f32.mrf.mxu2 }
 0x122   :  { %708 = vmatpush.msra.mxu1 %v618_v8  ;;  %1382 = vmatpush.msra.mxu3 %v618_v8  ;;  %v805_v8 = vld [vmem:[%s2201_s2 + $0x18] sm:$0xff] }
 0x123   :  { %v1644_v14 = vpop.f32.mrf.mxu0 }
 0x124   :  { %v352_v15 = vrot.slane %v1644_v14, 1  ;;  %v464_v16 = vrot.slane %v1644_v14, 2 }
 0x126   :  { %v465_v17 = vsel %vm456_vm3, %v462_v11, %v464_v16  ;;  %v353_v18 = vsel %vm344_vm4, %v350_v10, %v352_v15  ;;  %v617_v10 = vld [vmem:[%s2199_s4 + $0x18] sm:$0xff]  ;;  %v478_v11 = vrot.slane %v1664_v27, 2 }
 0x127   :  { %508 = vrot.lane.b32.xlu2 %v465_v17, %s1406_s3  ;;  %396 = vrot.lane.b32.xlu1 %v353_v18, %s1407_s23  ;;  %v615_v18 = vld [vmem:[%s2199_s4 + $0x8] sm:$0xff] }
 0x128   :  { %709 = vmatpush.msra.mxu1 %v617_v10  ;;  %1383 = vmatpush.msra.mxu3 %v617_v10 }
 0x129   :  { %v1713_v55 = vpop.f32.mrf.mxu2 }
 0x12a   :  { %710 = vmatpush.msra.mxu1 %v616_v13  ;;  %1384 = vmatpush.msra.mxu3 %v616_v13 }
 0x12b   :  { %v1652_v19 = vpop.f32.mrf.mxu0 }
 0x12c   :  { %v354_v20 = vrot.slane %v1652_v19, 1  ;;  %v466_v21 = vrot.slane %v1652_v19, 2  ;;  %711 = vmatpush.msra.mxu1 %v615_v18  ;;  %1385 = vmatpush.msra.mxu3 %v615_v18 }
 0x12e   :  { %v467_v22 = vsel %vm456_vm3, %v464_v16, %v466_v21  ;;  %v355_v23 = vsel %vm344_vm4, %v352_v15, %v354_v20  ;;  %v369_v15 = vsel %vm344_vm4, %v366_v57, %v368_v6  ;;  %v481_v16 = vsel %vm456_vm3, %v478_v11, %v480_v7 }
 0x12f   :  { %510 = vrot.lane.b32.xlu1 %v467_v22, %s1406_s3  ;;  %398 = vrot.lane.b32.xlu0 %v355_v23, %s1407_s23  ;;  %v614_v22 = vld [vmem:[%s2199_s4] sm:$0xff] }
 0x130   :  { %712 = vmatpush.msra.mxu1 %v614_v22  ;;  %1386 = vmatpush.msra.mxu3 %v614_v22  ;;  %v813_v22 = vld [vmem:[%s2201_s2 + $0x58] sm:$0xff] }
 0x131   :  { %v1741_v12 = vpop.f32.mrf.mxu2 }
 0x132   :  { %v374_v23 = vrot.slane %v1741_v12, 1 }
 0x133   :  { %v1660_v24 = vpop.f32.mrf.mxu0 }
 0x134   :  { %v356_v25 = vrot.slane %v1660_v24, 1  ;;  %v468_v26 = vrot.slane %v1660_v24, 2 }
 0x136   :  { %v469_v28 = vsel %vm456_vm3, %v466_v21, %v468_v26  ;;  %v357_v29 = vsel %vm344_vm4, %v354_v20, %v356_v25  ;;  %v370_v20 = vrot.slane %v1688_v44, 1  ;;  %v486_v21 = vrot.slane %v1741_v12, 2 }
 0x137   :  { %512 = vrot.lane.b32.xlu0 %v469_v28, %s1406_s3  ;;  %400 = vrot.lane.b32.xlu2 %v357_v29, %s1407_s23 }
 0x138   :  { %v371_v29 = vsel %vm344_vm4, %v368_v6, %v370_v20  ;;  %v807_v6 = vld [vmem:[%s2201_s2 + $0x28] sm:$0xff] }
 0x13b   :  { %v1670_v30 = vpop.f32.mrf.mxu0 }
 0x13c   :  { %v358_v31 = vrot.slane %v1670_v30, 1  ;;  %v470_v32 = vrot.slane %v1670_v30, 2 }
 0x13e   :  { %v471_v33 = vsel %vm456_vm3, %v468_v26, %v470_v32  ;;  %v359_v34 = vsel %vm344_vm4, %v356_v25, %v358_v31  ;;  %v484_v25 = vrot.slane %v1713_v55, 2  ;;  %v372_v26 = vrot.slane %v1713_v55, 1 }
 0x13f   :  { %514 = vrot.lane.b32.xlu2 %v471_v33, %s1406_s3  ;;  %402 = vrot.lane.b32.xlu1 %v359_v34, %s1407_s23 }
 0x140   :  { %v487_v28 = vsel %vm456_vm3, %v484_v25, %v486_v21 }
 0x143   :  { %v1680_v38 = vpop.f32.mrf.mxu0 }
 0x144   :  { %v360_v39 = vrot.slane %v1680_v38, 1  ;;  %v472_v40 = vrot.slane %v1680_v38, 2 }
 0x146   :  { %v473_v42 = vsel %vm456_vm3, %v470_v32, %v472_v40  ;;  %v361_v43 = vsel %vm344_vm4, %v358_v31, %v360_v39  ;;  %v1765_v31 = vpop.f32.mrf.mxu2  ;;  %v375_v32 = vsel %vm344_vm4, %v372_v26, %v374_v23 }
 0x147   :  { %516 = vrot.lane.b32.xlu1 %v473_v42, %s1406_s3  ;;  %404 = vrot.lane.b32.xlu0 %v361_v43, %s1407_s23  ;;  %v376_v33 = vrot.slane %v1765_v31, 1  ;;  %v488_v34 = vrot.slane %v1765_v31, 2 }
 0x149   :  { %v377_v42 = vsel %vm344_vm4, %v374_v23, %v376_v33  ;;  %v812_v23 = vld [vmem:[%s2201_s2 + $0x50] sm:$0xff] }
 0x14b   :  { %v1696_v47 = vpop.f32.mrf.mxu0 }
 0x14c   :  { %v362_v48 = vrot.slane %v1696_v47, 1  ;;  %v474_v49 = vrot.slane %v1696_v47, 2 }
 0x14e   :  { %v475_v50 = vsel %vm456_vm3, %v472_v40, %v474_v49  ;;  %v363_v51 = vsel %vm344_vm4, %v360_v39, %v362_v48  ;;  %v482_v39 = vrot.slane %v1688_v44, 2  ;;  %v489_v40 = vsel %vm456_vm3, %v486_v21, %v488_v34 }
 0x14f   :  { %518 = vrot.lane.b32.xlu0 %v475_v50, %s1406_s3  ;;  %406 = vrot.lane.b32.xlu2 %v363_v51, %s1407_s23  ;;  %v57_v50 = vld [vmem:[%s2197_s0 + $0xb0] sm:$0xff]  ;;  %v56_v51 = vld [vmem:[%s2197_s0 + $0xa8] sm:$0xff] }
 0x150   :  { %v483_v43 = vsel %vm456_vm3, %v480_v7, %v482_v39  ;;  %v485_v46 = vsel %vm456_vm3, %v482_v39, %v484_v25  ;;  %v806_v7 = vld [vmem:[%s2201_s2 + $0x20] sm:$0xff]  ;;  %v811_v25 = vld [vmem:[%s2201_s2 + $0x48] sm:$0xff]  ;;  %v816_v39 = vld [vmem:[%s2201_s2 + $0x70] sm:$0xff] }
 0x153   :  { %v1715_v56 = vpop.f32.mrf.mxu0 }
 0x154   :  { %v364_v62 = vrot.slane %v1715_v56, 1  ;;  %v476_v63 = vrot.slane %v1715_v56, 2 }
 0x156   :  { %v477_v1 = vsel %vm456_vm3, %v474_v49, %v476_v63  ;;  %v367_v2 = vsel %vm344_vm4, %v364_v62, %v366_v57  ;;  %v365_v3 = vsel %vm344_vm4, %v362_v48, %v364_v62  ;;  %v479_v17 = vsel %vm456_vm3, %v476_v63, %v478_v11  ;;  %v804_v63 = vld [vmem:[%s2201_s2 + $0x10] sm:$0xff] }
 0x157   :  { %520 = vrot.lane.b32.xlu2 %v477_v1, %s1406_s3  ;;  %410 = vrot.lane.b32.xlu0 %v367_v2, %s1407_s23  ;;  %v373_v48 = vsel %vm344_vm4, %v370_v20, %v372_v26  ;;  %v802_v1 = vld [vmem:[%s2201_s2] sm:$0xff] }
 0x158   :  { %408 = vrot.lane.b32.xlu1 %v365_v3, %s1407_s23 }
 0x15f   :  { %412 = vrot.lane.b32.xlu2 %v369_v15, %s1407_s23  ;;  %524 = vrot.lane.b32.xlu0 %v481_v16, %s1406_s3  ;;  %v810_v15 = vld [vmem:[%s2201_s2 + $0x40] sm:$0xff]  ;;  %v809_v16 = vld [vmem:[%s2201_s2 + $0x38] sm:$0xff] }
 0x160   :  { %522 = vrot.lane.b32.xlu1 %v479_v17, %s1406_s3  ;;  %v808_v17 = vld [vmem:[%s2201_s2 + $0x30] sm:$0xff] }
 0x167   :  { %530 = vrot.lane.b32.xlu2 %v487_v28, %s1406_s3  ;;  %414 = vrot.lane.b32.xlu0 %v371_v29, %s1407_s23 }
 0x168   :  { %418 = vrot.lane.b32.xlu1 %v375_v32, %s1407_s23 }
 0x169   :  { %v503_v49 = vpop.permute.xlu2 %502 }
 0x16f   :  { %532 = vrot.lane.b32.xlu0 %v489_v40, %s1406_s3  ;;  %420 = vrot.lane.b32.xlu2 %v377_v42, %s1407_s23  ;;  %v815_v40 = vld [vmem:[%s2201_s2 + $0x68] sm:$0xff]  ;;  %v814_v42 = vld [vmem:[%s2201_s2 + $0x60] sm:$0xff] }
 0x170   :  { %526 = vrot.lane.b32.xlu1 %v483_v43, %s1406_s3 }
 0x177   :  { %120 = vperm.xlu0 %1394, %v54_v45   ;;  %528 = vrot.lane.b32.xlu2 %v485_v46, %s1406_s3 }
 0x178   :  { %416 = vrot.lane.b32.xlu1 %v373_v48, %s1407_s23  ;;  %v59_v48 = vld [vmem:[%s2197_s0 + $0xc0] sm:$0x3] }
 0x179   :  { %v395_v62 = vpop.permute.xlu2 %394 }
 0x17f   :  { %129 = vperm.xlu0 %1394, %v57_v50   ;;  %126 = vperm.xlu2 %1396, %v56_v51   ;;  %v817_v50 = vld [vmem:[%s2201_s2 + $0x78] sm:$0xff] }
 0x180   :  { %123 = vperm.xlu1 %1395, %v55_v52  }
 0x181   :  { %v391_v53 = vpop.permute.xlu1 %390  ;;  %v509_v10 = vpop.permute.xlu2 %508 }
 0x182   :  { %v569_v54 = vsel %vm568_vm6, %v1616_v60, %v391_v53 }
 0x183   :  { %v592_v57 = vsel %vm591_vm5, %v569_v54, %v503_v49  ;;  %v58_v49 = vld [vmem:[%s2197_s0 + $0xb8] sm:$0xff]  ;;  %v320_v54 = vmax.f32 %v1612_v58, 0.0 }
 0x184   :  { %1333 = vmatmul.msk.f32.vlgmr.msra.gmra.mxu1 %vm630_vm7, %v592_v57 }
 0x187   :  { %836 = vperm.xlu0 %1394, %v804_v63   ;;  %831 = vperm.xlu2 %1396, %v803_v0  }
 0x188   :  { %826 = vperm.xlu1 %1395, %v802_v1  }
 0x189   :  { %v505_v60 = vpop.permute.xlu1 %504  ;;  %v393_v2 = vpop.permute.xlu0 %392 }
 0x18a   :  { %v570_v3 = vsel %vm568_vm6, %v1618_v61, %v393_v2  ;;  %v571_v61 = vsel %vm568_vm6, %v1628_v4, %v395_v62 }
 0x18b   :  { %v593_v5 = vsel %vm591_vm5, %v570_v3, %v505_v60 }
 0x18c   :  { %1334 = vmatmul.msk.f32.gmra.mxu1 %vm630_vm7, %v593_v5 }
 0x18f   :  { %851 = vperm.xlu0 %1394, %v807_v6   ;;  %846 = vperm.xlu2 %1396, %v806_v7  }
 0x190   :  { %841 = vperm.xlu1 %1395, %v805_v8  }
 0x191   :  { %v507_v11 = vpop.permute.xlu0 %506  ;;  %v401_v18 = vpop.permute.xlu2 %400 }
 0x192   :  { %v594_v13 = vsel %vm591_vm5, %v571_v61, %v507_v11 }
 0x194   :  { %1335 = vmatmul.msk.f32.gmra.mxu1 %vm630_vm7, %v594_v13 }
 0x197   :  { %866 = vperm.xlu0 %1394, %v810_v15   ;;  %861 = vperm.xlu2 %1396, %v809_v16  }
 0x198   :  { %856 = vperm.xlu1 %1395, %v808_v17  }
 0x199   :  { %v397_v4 = vpop.permute.xlu1 %396  ;;  %v515_v26 = vpop.permute.xlu2 %514 }
 0x19a   :  { %v572_v20 = vsel %vm568_vm6, %v1636_v9, %v397_v4 }
 0x19b   :  { %v595_v21 = vsel %vm591_vm5, %v572_v20, %v509_v10 }
 0x19c   :  { %1336 = vmatmul.msk.f32.gmra.mxu1 %vm630_vm7, %v595_v21 }
 0x19f   :  { %881 = vperm.xlu0 %1394, %v813_v22   ;;  %876 = vperm.xlu2 %1396, %v812_v23  }
 0x1a0   :  { %871 = vperm.xlu1 %1395, %v811_v25  }
 0x1a1   :  { %v511_v9 = vpop.permute.xlu1 %510  ;;  %v399_v28 = vpop.permute.xlu0 %398 }
 0x1a2   :  { %v573_v29 = vsel %vm568_vm6, %v1644_v14, %v399_v28  ;;  %v574_v14 = vsel %vm568_vm6, %v1652_v19, %v401_v18 }
 0x1a3   :  { %v596_v32 = vsel %vm591_vm5, %v573_v29, %v511_v9 }
 0x1a4   :  { %1337 = vmatmul.msk.f32.gmra.mxu1 %vm630_vm7, %v596_v32 }
 0x1a7   :  { %896 = vperm.xlu0 %1394, %v816_v39   ;;  %891 = vperm.xlu2 %1396, %v815_v40  }
 0x1a8   :  { %886 = vperm.xlu1 %1395, %v814_v42  }
 0x1a9   :  { %v407_v43 = vpop.permute.xlu2 %406  ;;  %v513_v45 = vpop.permute.xlu0 %512 }
 0x1aa   :  { %v597_v46 = vsel %vm591_vm5, %v574_v14, %v513_v45 }
 0x1ac   :  { %1338 = vmatmul.msk.f32.gmra.mxu1 %vm630_vm7, %v597_v46 }
 0x1af   :  { %135 = vperm.xlu0 %1394, %v59_v48   ;;  %132 = vperm.xlu2 %1396, %v58_v49  }
 0x1b0   :  { %901 = vperm.xlu1 %1395, %v817_v50  }
 0x1b1   :  { %v403_v19 = vpop.permute.xlu1 %402  ;;  %v521_v51 = vpop.permute.xlu2 %520 }
 0x1b2   :  { %v575_v52 = vsel %vm568_vm6, %v1660_v24, %v403_v19  ;;  %v577_v24 = vsel %vm568_vm6, %v1680_v38, %v407_v43 }
 0x1b3   :  { %v598_v53 = vsel %vm591_vm5, %v575_v52, %v515_v26 }
 0x1b4   :  { %1339 = vmatmul.msk.f32.gmra.mxu1 %vm630_vm7, %v598_v53 }
 0x1b8   :  { %1074 = vrot.lane.b32.xlu1 %v320_v54, %s1406_s3 }
 0x1b9   :  { %v517_v57 = vpop.permute.xlu1 %516  ;;  %v413_v62 = vpop.permute.xlu2 %412 }
 0x1ba   :  { %v405_v63 = vpop.permute.xlu0 %404 }
 0x1bb   :  { %v576_v0 = vsel %vm568_vm6, %v1670_v30, %v405_v63 }
 0x1bc   :  { %v599_v1 = vsel %vm591_vm5, %v576_v0, %v517_v57 }
 0x1bd   :  { %1340 = vmatmul.msk.f32.gmra.mxu1 %vm630_vm7, %v599_v1 }
 0x1c1   :  { %v531_v60 = vpop.permute.xlu2 %530 }
 0x1c2   :  { %v519_v2 = vpop.permute.xlu0 %518 }
 0x1c3   :  { %v600_v3 = vsel %vm591_vm5, %v577_v24, %v519_v2 }
 0x1c5   :  { %1341 = vmatmul.msk.f32.gmra.mxu1 %vm630_vm7, %v600_v3 }
 0x1c9   :  { %v421_v58 = vpop.permute.xlu2 %420 }
 0x1ca   :  { %v409_v5 = vpop.permute.xlu1 %408  ;;  %v411_v6 = vpop.permute.xlu0 %410  ;;  %v584_v20 = vsel %vm568_vm6, %v1741_v12, %v421_v58 }
 0x1cb   :  { %v578_v7 = vsel %vm568_vm6, %v1696_v47, %v409_v5  ;;  %v579_v10 = vsel %vm568_vm6, %v1715_v56, %v411_v6  ;;  %v580_v47 = vsel %vm568_vm6, %v1664_v27, %v413_v62 }
 0x1cc   :  { %v601_v30 = vsel %vm591_vm5, %v578_v7, %v521_v51 }
 0x1cd   :  { %1342 = vmatmul.msk.f32.gmra.mxu1 %vm630_vm7, %v601_v30 }
 0x1d1   :  { %v529_v8 = vpop.permute.xlu2 %528 }
 0x1d2   :  { %v523_v38 = vpop.permute.xlu1 %522  ;;  %v525_v61 = vpop.permute.xlu0 %524 }
 0x1d3   :  { %v602_v11 = vsel %vm591_vm5, %v579_v10, %v523_v38  ;;  %v603_v18 = vsel %vm591_vm5, %v580_v47, %v525_v61 }
 0x1d5   :  { %1343 = vmatmul.msk.f32.gmra.mxu1 %vm630_vm7, %v602_v11 }
 0x1d9   :  { %v127_v13 = vpop.permute.xlu2 %126 }
 0x1da   :  { %v419_v15 = vpop.permute.xlu1 %418  ;;  %v415_v16 = vpop.permute.xlu0 %414  ;;  %vm158_vm10 = vcmp.eq.s32.totalorder %v127_v13, %v1572_v37 }
 0x1db   :  { %v583_v17 = vsel %vm568_vm6, %v1713_v55, %v419_v15  ;;  %v581_v21 = vsel %vm568_vm6, %v1676_v35, %v415_v16 }
 0x1dc   :  { %v606_v4 = vsel %vm591_vm5, %v583_v17, %v531_v60 }
 0x1dd   :  { %1344 = vmatmul.msk.f32.gmra.mxu1 %vm630_vm7, %v603_v18  ;;  %1347 = vmatmul.msk.f32.vlgmr.msra.gmra.mxu3 %vm630_vm7, %v606_v4 }
 0x1e1   :  { %v832_v56 = vpop.permute.xlu2 %831 }
 0x1e2   :  { %v527_v22 = vpop.permute.xlu1 %526  ;;  %v533_v27 = vpop.permute.xlu0 %532 }
 0x1e3   :  { %v604_v23 = vsel %vm591_vm5, %v581_v21, %v527_v22  ;;  %v607_v55 = vsel %vm591_vm5, %v584_v20, %v533_v27 }
 0x1e5   :  { %1345 = vmatmul.msk.f32.gmra.mxu1 %vm630_vm7, %v604_v23  ;;  %1348 = vmatmul.msk.f32.gmra.mxu3 %vm630_vm7, %v607_v55 }
 0x1e9   :  { %v1916_v25 = vpop.permute.xlu2 %846 }
 0x1ea   :  { %v417_v26 = vpop.permute.xlu1 %416  ;;  %v121_v9 = vpop.permute.xlu0 %120 }
 0x1eb   :  { %v582_v12 = vsel %vm568_vm6, %v1688_v44, %v417_v26  ;;  %vm156_vm8 = vcmp.eq.s32.totalorder %v121_v9, %v1572_v37  ;;  %v1935_v44 = vld [vmem:[%s2200_s5] ss:$0 sm:$0xff] }
 0x1ec   :  { %1327 = vmatmul.msk.f32.gmra.mxu2 %vm156_vm8, %v1405_v41  ;;  %v605_v35 = vsel %vm591_vm5, %v582_v12, %v529_v8  ;;  %vm1068_vm8 = vcmask 1046534  }
 0x1ed   :  { %1346 = vmatmul.msk.f32.gmra.mxu1 %vm630_vm7, %v605_v35 }
 0x1f1   :  { %v1924_v28 = vpop.permute.xlu2 %861 }
 0x1f2   :  { %v124_v29 = vpop.permute.xlu1 %123  ;;  %v130_v32 = vpop.permute.xlu0 %129 }
 0x1f3   :  { %vm157_vm9 = vcmp.eq.s32.totalorder %v124_v29, %v1572_v37  ;;  %vm159_vm11 = vcmp.eq.s32.totalorder %v130_v32, %v1572_v37 }
 0x1f4   :  { %1328 = vmatmul.msk.f32.gmra.mxu2 %vm157_vm9, %v1405_v41  ;;  %vm1070_vm9 = vcmask 1047559  }
 0x1f9   :  { %v1928_v39 = vpop.permute.xlu2 %876 }
 0x1fa   :  { %v837_v40 = vpop.permute.xlu0 %836  ;;  %v827_v51 = vpop.permute.xlu1 %826 }
 0x1fc   :  { %1329 = vmatmul.msk.f32.gmra.mxu2 %vm158_vm10, %v1405_v41 }
 0x201   :  { %v714_v42 = vpop.f32.mrf.mxu1  ;;  %v1937_v14 = vpop.permute.xlu2 %891 }
 0x202   :  { %v852_v43 = vpop.permute.xlu0 %851  ;;  %v715_v45 = vadd.f32 %v1935_v44, %v714_v42  ;;  %v842_v30 = vpop.permute.xlu1 %841 }
 0x204   :  { %1330 = vmatmul.msk.f32.gmra.mxu2 %vm159_vm11, %v1405_v41  ;;  %v780_v46 = vmax.f32 %v715_v45, 0.0 }
 0x206   :  { %v934_v52 = vmul.f32 %v827_v51, %v780_v46 }
 0x208   :  { %v956_v57 = vsel %vm591_vm5, %v934_v52, -inf }
 0x209   :  { %v133_v48 = vpop.permute.xlu2 %132  ;;  %v717_v49 = vpop.f32.mrf.mxu1 }
 0x20a   :  { %vm160_vm12 = vcmp.eq.s32.totalorder %v133_v48, %v1572_v37  ;;  %v718_v50 = vadd.f32 %v1935_v44, %v717_v49  ;;  %v1944_v19 = vpop.permute.xlu0 %866 }
 0x20c   :  { %v781_v53 = vmax.f32 %v718_v50, 0.0  ;;  %1331 = vmatmul.msk.f32.gmra.mxu2 %vm160_vm12, %v1405_v41  ;;  %vm1140_vm12 = vcmask 64512  }
 0x20e   :  { %v935_v54 = vmul.f32 %v832_v56, %v781_v53 }
 0x210   :  { %v957_v62 = vsel %vm591_vm5, %v935_v54, -inf }
 0x211   :  { %v958_v63 = vmax.f32 %v956_v57, %v957_v62  ;;  %v720_v0 = vpop.f32.mrf.mxu1 }
 0x212   :  { %v721_v1 = vadd.f32 %v1935_v44, %v720_v0  ;;  %v1950_v60 = vpop.permute.xlu0 %881 }
 0x213   :  { %v959_v3 = vrot.slane %v958_v63, 4 }
 0x214   :  { %v782_v24 = vmax.f32 %v721_v1, 0.0 }
 0x215   :  { %v960_v8 = vmax.f32 %v958_v63, %v959_v3 }
 0x216   :  { %v936_v2 = vmul.f32 %v837_v40, %v782_v24 }
 0x217   :  { %v961_v11 = vrot.slane %v960_v8, 2 }
 0x218   :  { %v965_v38 = vsel %vm591_vm5, %v936_v2, -inf }
 0x219   :  { %v723_v58 = vpop.f32.mrf.mxu1  ;;  %v962_v4 = vmax.f32 %v960_v8, %v961_v11 }
 0x21a   :  { %v724_v5 = vadd.f32 %v1935_v44, %v723_v58  ;;  %v1953_v6 = vpop.permute.xlu0 %896 }
 0x21b   :  { %v963_v22 = vrot.slane %v962_v4, 1 }
 0x21c   :  { %v783_v7 = vmax.f32 %v724_v5, 0.0 }
 0x21d   :  { %v964_v12 = vmax.f32 %v962_v4, %v963_v22  ;;  %v1085_v22 = vld [vmem:[%s2202_s6 + $0x38] sm:$0xff] }
 0x21e   :  { %v937_v10 = vmul.f32 %v842_v30, %v783_v7 }
 0x220   :  { %v966_v61 = vsel %vm591_vm5, %v937_v10, -inf }
 0x221   :  { %v967_v13 = vmax.f32 %v965_v38, %v966_v61  ;;  %v726_v15 = vpop.f32.mrf.mxu1  ;;  %v1089_v61 = vld [vmem:[%s2202_s6 + $0x58] sm:$0xff] }
 0x222   :  { %v727_v16 = vadd.f32 %v1935_v44, %v726_v15  ;;  %v136_v47 = vpop.permute.xlu0 %135  ;;  %1101 = vmatpush.msrb.mxu2 %v1089_v61 }
 0x223   :  { %v968_v17 = vrot.slane %v967_v13, 4  ;;  %vm161_vm13 = vcmp.eq.s32.totalorder %v136_v47, %v1572_v37 }
 0x224   :  { %v784_v18 = vmax.f32 %v727_v16, 0.0  ;;  %1332 = vmatmul.msk.f32.gmra.mxu2 %vm161_vm13, %v1405_v41 }
 0x225   :  { %v969_v56 = vmax.f32 %v967_v13, %v968_v17  ;;  %v1088_v13 = vld [vmem:[%s2202_s6 + $0x50] sm:$0xff]  ;;  %v1087_v17 = vld [vmem:[%s2202_s6 + $0x48] sm:$0xff] }
 0x226   :  { %v938_v20 = vmul.f32 %v1916_v25, %v784_v18  ;;  %1102 = vmatpush.msrb.mxu2 %v1088_v13 }
 0x227   :  { %v970_v21 = vrot.slane %v969_v56, 2 }
 0x228   :  { %v974_v41 = vsel %vm591_vm5, %v938_v20, -inf  ;;  %1103 = vmatpush.msrb.mxu2 %v1087_v17 }
 0x229   :  { %v971_v27 = vmax.f32 %v969_v56, %v970_v21  ;;  %v729_v23 = vpop.f32.mrf.mxu1 }
 0x22a   :  { %v730_v55 = vadd.f32 %v1935_v44, %v729_v23  ;;  %v1084_v23 = vld [vmem:[%s2202_s6 + $0x30] sm:$0xff] }
 0x22b   :  { %v972_v26 = vrot.slane %v971_v27, 1 }
 0x22c   :  { %v785_v9 = vmax.f32 %v730_v55, 0.0 }
 0x22d   :  { %v973_v35 = vmax.f32 %v971_v27, %v972_v26 }
 0x22e   :  { %v939_v29 = vmul.f32 %v852_v43, %v785_v9  ;;  %v857_v43 = vpop.permute.xlu1 %856 }
 0x22f   :  { %v1059_v32 = vsel %vm1058_vm14, %v973_v35, %v964_v12  ;;  %v1083_v12 = vld [vmem:[%s2202_s6 + $0x28] sm:$0xff] }
 0x230   :  { %v975_v40 = vsel %vm591_vm5, %v939_v29, -inf  ;;  %v1082_v29 = vld [vmem:[%s2202_s6 + $0x20] sm:$0xff] }
 0x231   :  { %v976_v42 = vmax.f32 %v974_v41, %v975_v40  ;;  %v732_v25 = vpop.f32.mrf.mxu1 }
 0x232   :  { %v733_v48 = vadd.f32 %v1935_v44, %v732_v25 }
 0x233   :  { %v977_v45 = vrot.slane %v976_v42, 4 }
 0x234   :  { %v786_v51 = vmax.f32 %v733_v48, 0.0 }
 0x235   :  { %v978_v46 = vmax.f32 %v976_v42, %v977_v45  ;;  %v1081_v45 = vld [vmem:[%s2202_s6 + $0x18] sm:$0xff] }
 0x236   :  { %v940_v63 = vmul.f32 %v857_v43, %v786_v51  ;;  %v872_v15 = vpop.permute.xlu1 %871 }
 0x237   :  { %v979_v49 = vrot.slane %v978_v46, 2 }
 0x238   :  { %v983_v2 = vsel %vm591_vm5, %v940_v63, -inf }
 0x239   :  { %v980_v50 = vmax.f32 %v978_v46, %v979_v49  ;;  %v1080_v49 = vld [vmem:[%s2202_s6 + $0x10] sm:$0xff] }
 0x23a   :  { %v735_v52 = vpop.f32.mrf.mxu1 }
 0x23b   :  { %v981_v53 = vrot.slane %v980_v50, 1  ;;  %v736_v54 = vadd.f32 %v1935_v44, %v735_v52 }
 0x23d   :  { %v982_v57 = vmax.f32 %v980_v50, %v981_v53  ;;  %v787_v62 = vmax.f32 %v736_v54, 0.0  ;;  %v1079_v53 = vld [vmem:[%s2202_s6 + $0x8] sm:$0xff] }
 0x23f   :  { %v1061_v0 = vsel %vm1060_vm15, %v982_v57, %v1059_v32  ;;  %v941_v1 = vmul.f32 %v1924_v28, %v787_v62  ;;  %v1078_v57 = vld [vmem:[%s2202_s6] sm:$0xff] }
 0x241   :  { %v984_v24 = vsel %vm591_vm5, %v941_v1, -inf  ;;  %v887_v1 = vpop.permute.xlu1 %886 }
 0x242   :  { %v738_v3 = vpop.f32.mrf.mxu1  ;;  %v985_v58 = vmax.f32 %v983_v2, %v984_v24 }
 0x243   :  { %v739_v5 = vadd.f32 %v1935_v44, %v738_v3 }
 0x244   :  { %v986_v7 = vrot.slane %v985_v58, 4 }
 0x245   :  { %v788_v30 = vmax.f32 %v739_v5, 0.0 }
 0x246   :  { %v987_v10 = vmax.f32 %v985_v58, %v986_v7 }
 0x247   :  { %v942_v28 = vmul.f32 %v1944_v19, %v788_v30  ;;  %v1086_v19 = vld [vmem:[%s2202_s6 + $0x40] sm:$0xff] }
 0x248   :  { %v988_v16 = vrot.slane %v987_v10, 2  ;;  %1104 = vmatpush.msrb.mxu2 %v1086_v19 }
 0x249   :  { %v992_v18 = vsel %vm591_vm5, %v942_v28, -inf }
 0x24a   :  { %v741_v8 = vpop.f32.mrf.mxu1  ;;  %v989_v21 = vmax.f32 %v987_v10, %v988_v16  ;;  %1105 = vmatpush.msrb.mxu2 %v1085_v22 }
 0x24b   :  { %v742_v38 = vadd.f32 %v1935_v44, %v741_v8 }
 0x24c   :  { %1106 = vmatpush.msrb.mxu2 %v1084_v23  ;;  %v990_v9 = vrot.slane %v989_v21, 1 }
 0x24d   :  { %v789_v11 = vmax.f32 %v742_v38, 0.0 }
 0x24e   :  { %1107 = vmatpush.msrb.mxu2 %v1083_v12  ;;  %v991_v42 = vmax.f32 %v989_v21, %v990_v9 }
 0x24f   :  { %v943_v47 = vmul.f32 %v872_v15, %v789_v11  ;;  %v902_v11 = vpop.permute.xlu1 %901 }
 0x250   :  { %1108 = vmatpush.msrb.mxu2 %v1082_v29  ;;  %v1063_v54 = vsel %vm1062_vm0, %v991_v42, %v1061_v0 }
 0x251   :  { %v993_v4 = vsel %vm591_vm5, %v943_v47, -inf }
 0x252   :  { %v994_v56 = vmax.f32 %v992_v18, %v993_v4  ;;  %v744_v20 = vpop.f32.mrf.mxu1  ;;  %1109 = vmatpush.msrb.mxu2 %v1081_v45 }
 0x253   :  { %v745_v26 = vadd.f32 %v1935_v44, %v744_v20 }
 0x254   :  { %v995_v27 = vrot.slane %v994_v56, 4  ;;  %1110 = vmatpush.msrb.mxu2 %v1080_v49 }
 0x255   :  { %v790_v41 = vmax.f32 %v745_v26, 0.0 }
 0x256   :  { %v996_v55 = vmax.f32 %v994_v56, %v995_v27  ;;  %1111 = vmatpush.msrb.mxu2 %v1079_v53 }
 0x257   :  { %v944_v51 = vmul.f32 %v1928_v39, %v790_v41 }
 0x258   :  { %v997_v35 = vrot.slane %v996_v55, 2  ;;  %1112 = vmatpush.msrb.mxu2 %v1078_v57 }
 0x259   :  { %v1001_v39 = vsel %vm591_vm5, %v944_v51, -inf }
 0x25a   :  { %v998_v32 = vmax.f32 %v996_v55, %v997_v35  ;;  %v747_v40 = vpop.f32.mrf.mxu1 }
 0x25b   :  { %v748_v25 = vadd.f32 %v1935_v44, %v747_v40 }
 0x25c   :  { %v999_v46 = vrot.slane %v998_v32, 1 }
 0x25d   :  { %v791_v48 = vmax.f32 %v748_v25, 0.0 }
 0x25e   :  { %v1000_v50 = vmax.f32 %v998_v32, %v999_v46 }
 0x25f   :  { %v945_v52 = vmul.f32 %v1950_v60, %v791_v48 }
 0x260   :  { %v756_v43 = vpop.f32.mrf.mxu3  ;;  %v2015_v62 = vsel %vm1064_vm1, %v1000_v50, %v1063_v54 }
 0x261   :  { %v1002_v63 = vsel %vm591_vm5, %v945_v52, -inf  ;;  %v757_v2 = vadd.f32 %v1935_v44, %v756_v43 }
 0x262   :  { %v750_v24 = vpop.f32.mrf.mxu1  ;;  %v1003_v60 = vmax.f32 %v1001_v39, %v1002_v63 }
 0x263   :  { %v751_v0 = vadd.f32 %v1935_v44, %v750_v24  ;;  %v794_v58 = vmax.f32 %v757_v2, 0.0 }
 0x264   :  { %v1004_v3 = vrot.slane %v1003_v60, 4 }
 0x265   :  { %v792_v7 = vmax.f32 %v751_v0, 0.0  ;;  %v948_v38 = vmul.f32 %v1953_v6, %v794_v58 }
 0x266   :  { %v1005_v10 = vmax.f32 %v1003_v60, %v1004_v3 }
 0x267   :  { %v946_v13 = vmul.f32 %v887_v1, %v792_v7  ;;  %v1019_v17 = vsel %vm591_vm5, %v948_v38, -inf  ;;  %v1075_v1 = vpop.permute.xlu1 %1074 }
 0x268   :  { %v759_v5 = vpop.f32.mrf.mxu3  ;;  %v1006_v47 = vrot.slane %v1005_v10, 2 }
 0x269   :  { %v760_v30 = vadd.f32 %v1935_v44, %v759_v5  ;;  %v1010_v21 = vsel %vm591_vm5, %v946_v13, -inf }
 0x26a   :  { %v753_v8 = vpop.f32.mrf.mxu1  ;;  %v1007_v26 = vmax.f32 %v1005_v10, %v1006_v47 }
 0x26b   :  { %v795_v61 = vmax.f32 %v760_v30, 0.0  ;;  %v754_v28 = vadd.f32 %v1935_v44, %v753_v8 }
 0x26c   :  { %v1008_v32 = vrot.slane %v1007_v26, 1 }
 0x26d   :  { %v949_v15 = vmul.f32 %v902_v11, %v795_v61  ;;  %v793_v16 = vmax.f32 %v754_v28, 0.0 }
 0x26e   :  { %v1009_v48 = vmax.f32 %v1007_v26, %v1008_v32 }
 0x26f   :  { %v1020_v18 = vsel %vm591_vm5, %v949_v15, -inf  ;;  %v947_v4 = vmul.f32 %v1937_v14, %v793_v16  ;;  %v2027_v19 = vpop.f32.mrf.mxu2 }
 0x270   :  { %v1021_v56 = vmax.f32 %v1019_v17, %v1020_v18  ;;  %v378_v20 = vrot.slane %v2027_v19, 1  ;;  %v490_v6 = vrot.slane %v2027_v19, 2  ;;  %v1067_v54 = vsel %vm1066_vm2, %v1009_v48, %v2015_v62  ;;  %v1118_v17 = vld [vmem:[%s2204_s1] sm:$0xff] }
 0x271   :  { %v1011_v22 = vsel %vm591_vm5, %v947_v4, -inf }
 0x272   :  { %v1022_v27 = vrot.slane %v1021_v56, 4  ;;  %v1012_v23 = vmax.f32 %v1010_v21, %v1011_v22  ;;  %v491_v55 = vsel %vm456_vm3, %v488_v34, %v490_v6  ;;  %v379_v14 = vsel %vm344_vm4, %v376_v33, %v378_v20 }
 0x273   :  { %534 = vrot.lane.b32.xlu0 %v491_v55, %s1406_s3  ;;  %422 = vrot.lane.b32.xlu2 %v379_v14, %s1407_s23 }
 0x274   :  { %v1023_v9 = vmax.f32 %v1021_v56, %v1022_v27  ;;  %v1013_v12 = vrot.slane %v1012_v23, 4 }
 0x276   :  { %v1024_v35 = vrot.slane %v1023_v9, 2  ;;  %v1014_v29 = vmax.f32 %v1012_v23, %v1013_v12 }
 0x277   :  { %v2041_v41 = vpop.f32.mrf.mxu2 }
 0x278   :  { %v1025_v40 = vmax.f32 %v1023_v9, %v1024_v35  ;;  %v1015_v42 = vrot.slane %v1014_v29, 2  ;;  %v380_v34 = vrot.slane %v2041_v41, 1  ;;  %v492_v25 = vrot.slane %v2041_v41, 2 }
 0x27a   :  { %v1016_v45 = vmax.f32 %v1014_v29, %v1015_v42  ;;  %v493_v33 = vsel %vm456_vm3, %v490_v6, %v492_v25  ;;  %v381_v46 = vsel %vm344_vm4, %v378_v20, %v380_v34  ;;  %v1026_v49 = vrot.slane %v1025_v40, 1 }
 0x27b   :  { %536 = vrot.lane.b32.xlu2 %v493_v33, %s1406_s3  ;;  %424 = vrot.lane.b32.xlu1 %v381_v46, %s1407_s23  ;;  %v1132_v42 = vshrl.u32 %v60_v36, 7  ;;  %v1410_v36 = vmov 0.0  }
 0x27c   :  { %v1017_v50 = vrot.slane %v1016_v45, 1  ;;  %v1027_v53 = vmax.f32 %v1025_v40, %v1026_v49 }
 0x27d   :  { %v1133_v33 = vmul.u32 4, %v1132_v42 }
 0x27e   :  { %v1018_v51 = vmax.f32 %v1016_v45, %v1017_v50 }
 0x27f   :  { %v308_v52 = vpop.f32.mrf.mxu2  ;;  %v1135_v49 = vadd.s32 4, %v1133_v33 }
 0x280   :  { %v382_v43 = vrot.slane %v308_v52, 1  ;;  %v494_v57 = vrot.slane %v308_v52, 2  ;;  %v1069_v63 = vsel %vm1068_vm8, %v1018_v51, %v1067_v54 }
 0x281   :  { %v1071_v39 = vsel %vm1070_vm9, %v1027_v53, %v1069_v63  ;;  %vm1136_vm10 = vcmp.lt.s32.totalorder %v1572_v37, %v1135_v49  ;;  %v1242_v49 = vld [vmem:[%s2206_s8 + $0x60] sm:$0xff] }
 0x282   :  { %v495_v24 = vsel %vm456_vm3, %v492_v25, %v494_v57  ;;  %v383_v60 = vsel %vm344_vm4, %v380_v34, %v382_v43  ;;  %v1077_v2 = vsel %vm591_vm5, %v1071_v39, %v1075_v1 }
 0x283   :  { %538 = vrot.lane.b32.xlu1 %v495_v24, %s1406_s3  ;;  %426 = vrot.lane.b32.xlu0 %v383_v60, %s1407_s23  ;;  %v818_v60 = vld [vmem:[%s2201_s2 + $0x80] sm:$0xff] }
 0x284   :  { %1355 = vmatmul.msk.f32.vlgmr.msrb.gmra.mxu2 %vm630_vm7, %v1077_v2 }
 0x287   :  { %v311_v0 = vpop.f32.mrf.mxu2 }
 0x288   :  { %v384_v3 = vrot.slane %v311_v0, 1  ;;  %v496_v62 = vrot.slane %v311_v0, 2 }
 0x28a   :  { %v497_v58 = vsel %vm456_vm3, %v494_v57, %v496_v62  ;;  %v385_v5 = vsel %vm344_vm4, %v382_v43, %v384_v3 }
 0x28b   :  { %540 = vrot.lane.b32.xlu0 %v497_v58, %s1406_s3  ;;  %428 = vrot.lane.b32.xlu2 %v385_v5, %s1407_s23  ;;  %v819_v58 = vld [vmem:[%s2201_s2 + $0x88] sm:$0xff] }
 0x28f   :  { %v314_v7 = vpop.f32.mrf.mxu2 }
 0x290   :  { %v386_v30 = vrot.slane %v314_v7, 1  ;;  %v498_v8 = vrot.slane %v314_v7, 2 }
 0x292   :  { %v499_v10 = vsel %vm456_vm3, %v496_v62, %v498_v8  ;;  %v387_v38 = vsel %vm344_vm4, %v384_v3, %v386_v30  ;;  %v820_v62 = vld [vmem:[%s2201_s2 + $0x90] sm:$0xff] }
 0x293   :  { %542 = vrot.lane.b32.xlu2 %v499_v10, %s1406_s3  ;;  %430 = vrot.lane.b32.xlu1 %v387_v38, %s1407_s23 }
 0x29b   :  { %1124 = vrot.lane.b32.xlu1 %v1118_v17, %s1408_s15 }
 0x2a7   :  { %v317_v61 = vpop.f32.mrf.mxu2 }
 0x2a8   :  { %v388_v28 = vrot.slane %v317_v61, 1 }
 0x2aa   :  { %v389_v11 = vsel %vm344_vm4, %v386_v30, %v388_v28  ;;  %vm1127_vm4 = vcmask 7168  }
 0x2ab   :  { %432 = vrot.lane.b32.xlu2 %v389_v11, %s1407_s23 }
 0x2cd   :  { %v423_v13 = vpop.permute.xlu2 %422 }
 0x2ce   :  { %v585_v15 = vsel %vm568_vm6, %v1765_v31, %v423_v13 }
 0x2d5   :  { %v537_v4 = vpop.permute.xlu2 %536 }
 0x2e5   :  { %v535_v16 = vpop.permute.xlu0 %534  ;;  %v429_v27 = vpop.permute.xlu2 %428 }
 0x2e6   :  { %v608_v47 = vsel %vm591_vm5, %v585_v15, %v535_v16  ;;  %v588_v23 = vsel %vm568_vm6, %v308_v52, %v429_v27 }
 0x2e7   :  { %1349 = vmatmul.msk.f32.gmra.mxu3 %vm630_vm7, %v608_v47 }
 0x2ed   :  { %v425_v18 = vpop.permute.xlu1 %424  ;;  %v543_v9 = vpop.permute.xlu2 %542 }
 0x2ee   :  { %v586_v56 = vsel %vm568_vm6, %v2027_v19, %v425_v18  ;;  %v1398_v19 = vld [vmem:[%s2203_s7] ss:$0 sm:$0xff]  ;;  %s1409_s7 = smov 127  }
 0x2ef   :  { %v609_v20 = vsel %vm591_vm5, %v586_v56, %v537_v4 }
 0x2f0   :  { %1350 = vmatmul.msk.f32.gmra.mxu3 %vm630_vm7, %v609_v20 }
 0x2f5   :  { %v539_v31 = vpop.permute.xlu1 %538  ;;  %v427_v6 = vpop.permute.xlu0 %426 }
 0x2f6   :  { %v587_v21 = vsel %vm568_vm6, %v2041_v41, %v427_v6  ;;  %v500_v41 = vrot.slane %v317_v61, 2 }
 0x2f7   :  { %v610_v22 = vsel %vm591_vm5, %v587_v21, %v539_v31 }
 0x2f8   :  { %1351 = vmatmul.msk.f32.gmra.mxu3 %vm630_vm7, %v610_v22  ;;  %v501_v40 = vsel %vm456_vm3, %v498_v8, %v500_v41  ;;  %vm1134_vm3 = vcmp.ge.s32.totalorder %v1572_v37, %v1133_v33  ;;  %v821_v41 = vld [vmem:[%s2201_s2 + $0x98] sm:$0xff]  ;;  %v1243_v33 = vld [vmem:[%s2206_s8 + $0x68] sm:$0xff] }
 0x2f9   :  { %vm1137_vm11 = vmand %vm1134_vm3, %vm1136_vm10 }
 0x2fa   :  { %v1356_v54 = vsel %vm1137_vm11, 1.0, %v1410_v36  ;;  %v1240_v36 = vld [vmem:[%s2206_s8 + $0x50] sm:$0xff] }
 0x2fd   :  { %v541_v55 = vpop.permute.xlu0 %540 }
 0x2fe   :  { %v611_v14 = vsel %vm591_vm5, %v588_v23, %v541_v55 }
 0x300   :  { %1352 = vmatmul.msk.f32.gmra.mxu3 %vm630_vm7, %v611_v14 }
 0x305   :  { %v431_v26 = vpop.permute.xlu1 %430  ;;  %v433_v48 = vpop.permute.xlu2 %432 }
 0x306   :  { %v589_v12 = vsel %vm568_vm6, %v311_v0, %v431_v26  ;;  %v590_v50 = vsel %vm568_vm6, %v314_v7, %v433_v48  ;;  %v823_v0 = vld [vmem:[%s2201_s2 + $0xa8] sm:$0xff] }
 0x307   :  { %v1114_v35 = vpop.f32.mrf.mxu2  ;;  %v612_v29 = vsel %vm591_vm5, %v589_v12, %v543_v9 }
 0x308   :  { %v1115_v32 = vadd.f32 %v1398_v19, %v1114_v35  ;;  %1353 = vmatmul.msk.f32.gmra.mxu3 %vm630_vm7, %v612_v29 }
 0x30a   :  { %1120 = vrot.lane.b32.xlu0 %v1115_v32, %s1406_s3  ;;  %v1117_v5 = vmax.f32 %v1115_v32, 0.0 }
 0x30d   :  { %v1125_v34 = vpop.permute.xlu1 %1124 }
 0x312   :  { %544 = vrot.lane.b32.xlu0 %v501_v40, %s1406_s3  ;;  %v822_v40 = vld [vmem:[%s2201_s2 + $0xa0] sm:$0xff] }
 0x36a   :  { %v762_v43 = vpop.f32.mrf.mxu3 }
 0x36b   :  { %v763_v10 = vadd.f32 %v1935_v44, %v762_v43 }
 0x36d   :  { %v796_v11 = vmax.f32 %v763_v10, 0.0 }
 0x373   :  { %v765_v57 = vpop.f32.mrf.mxu3 }
 0x374   :  { %v766_v4 = vadd.f32 %v1935_v44, %v765_v57 }
 0x376   :  { %v797_v23 = vmax.f32 %v766_v4, 0.0 }
 0x37b   :  { %v768_v63 = vpop.f32.mrf.mxu3 }
 0x37c   :  { %v1121_v25 = vpop.permute.xlu0 %1120  ;;  %v769_v61 = vadd.f32 %v1935_v44, %v768_v63  ;;  %v1239_v63 = vld [vmem:[%s2206_s8 + $0x48] sm:$0xff] }
 0x37d   :  { %v1128_v45 = vsel %vm1127_vm4, %v1121_v25, %v1125_v34  ;;  %v1245_v34 = vld [vmem:[%s2206_s8 + $0x78] sm:$0xff]  ;;  %v1244_v25 = vld [vmem:[%s2206_s8 + $0x70] sm:$0xff] }
 0x37e   :  { %v1129_v46 = vmul.f32 1.442695, %v1128_v45  ;;  %v798_v13 = vmax.f32 %v769_v61, 0.0 }
 0x380   :  { %1400 = vpow2.f32 %v1129_v46 }
 0x383   :  { %v2100_v1 = vpop.f32.mrf.mxu3 }
 0x384   :  { %v545_v51 = vpop.permute.xlu0 %544 }
 0x385   :  { %v613_v52 = vsel %vm591_vm5, %v590_v50, %v545_v51  ;;  %v772_v50 = vadd.f32 %v1935_v44, %v2100_v1 }
 0x386   :  { %v1401_v53 = vpop.eup %1400  ;;  %1354 = vmatmul.msk.f32.gmra.mxu3 %vm630_vm7, %v613_v52  ;;  %v1241_v52 = vld [vmem:[%s2206_s8 + $0x58] sm:$0xff] }
 0x387   :  { %1165 = vrot.lane.b32.xlu1 %v1401_v53, %s1409_s7  ;;  %1159 = vmatpush.msrb.mxu3 %v1401_v53 }
 0x38b   :  { %v2102_v37 = vpop.f32.mrf.mxu3 }
 0x38e   :  { %1357 = vmatmul.msk.f32.vlgmr.msrb.gmra.mxu3 %vm1140_vm12, %v1356_v54 }
 0x3f9   :  { %v1166_v39 = vpop.permute.xlu1 %1165 }
 0x3fa   :  { %v1168_v24 = vmul.f32 %v1401_v53, %v1166_v39  ;;  %v1238_v39 = vld [vmem:[%s2206_s8 + $0x40] sm:$0xff] }
 0x3fc   :  { %1171 = vperm.xlu2 %1396, %v1168_v24   ;;  %v775_v24 = vadd.f32 %v1935_v44, %v2102_v37  ;;  %v1235_v37 = vld [vmem:[%s2206_s8 + $0x28] sm:$0xff] }
 0x404   :  { %906 = vperm.xlu2 %1396, %v818_v60  }
 0x409   :  { %v777_v2 = vpop.f32.mrf.mxu3 }
 0x40a   :  { %v778_v46 = vadd.f32 %v1935_v44, %v777_v2 }
 0x40c   :  { %931 = vperm.xlu2 %1396, %v823_v0   ;;  %v801_v53 = vmax.f32 %v778_v46, 0.0 }
 0x411   :  { %v1161_v3 = vpop.f32.mrf.mxu3 }
 0x412   :  { %1196 = vrot.lane.b32.xlu0 %v1161_v3, %s1409_s7 }
 0x41a   :  { %916 = vperm.xlu0 %1394, %v820_v62   ;;  %v1237_v62 = vld [vmem:[%s2206_s8 + $0x38] sm:$0xff] }
 0x422   :  { %911 = vperm.xlu0 %1394, %v819_v58   ;;  %v1236_v58 = vld [vmem:[%s2206_s8 + $0x30] sm:$0xff] }
 0x456   :  { %v1172_v7 = vpop.permute.xlu2 %1171 }
 0x457   :  { %v1174_v30 = vmul.f32 %v1172_v7, %v1117_v5  ;;  %v800_v5 = vmax.f32 %v775_v24, 0.0 }
 0x459   :  { %1190 = vmatpush.msra.mxu3 %v1174_v30 }
 0x45a   :  { %1358 = vmatmul.msk.f32.vlgmr.msra.gmra.mxu3 %vm1140_vm12, %v1356_v54  ;;  %v799_v54 = vmax.f32 %v772_v50, 0.0 }
 0x45b   :  { %1250 = vmatpush.msrb.mxu3 %v1245_v34 }
 0x45d   :  { %1251 = vmatpush.msrb.mxu3 %v1244_v25 }
 0x45e   :  { %v907_v28 = vpop.permute.xlu2 %906 }
 0x45f   :  { %v950_v15 = vmul.f32 %v907_v28, %v796_v11  ;;  %1252 = vmatpush.msrb.mxu3 %v1243_v33  ;;  %v1233_v28 = vld [vmem:[%s2206_s8 + $0x18] sm:$0xff] }
 0x461   :  { %v1028_v56 = vsel %vm591_vm5, %v950_v15, -inf  ;;  %1253 = vmatpush.msrb.mxu3 %v1242_v49 }
 0x463   :  { %1254 = vmatpush.msrb.mxu3 %v1241_v52 }
 0x465   :  { %1255 = vmatpush.msrb.mxu3 %v1240_v36 }
 0x466   :  { %v932_v51 = vpop.permute.xlu2 %931 }
 0x467   :  { %v955_v43 = vmul.f32 %v932_v51, %v801_v53  ;;  %1256 = vmatpush.msrb.mxu3 %v1239_v63 }
 0x469   :  { %v1041_v60 = vsel %vm591_vm5, %v955_v43, -inf  ;;  %1257 = vmatpush.msrb.mxu3 %v1238_v39 }
 0x46b   :  { %1258 = vmatpush.msrb.mxu3 %v1237_v62 }
 0x46d   :  { %1259 = vmatpush.msrb.mxu3 %v1236_v58 }
 0x46f   :  { %1260 = vmatpush.msrb.mxu3 %v1235_v37 }
 0x484   :  { %v1197_v8 = vpop.permute.xlu0 %1196 }
 0x485   :  { %v1199_v38 = vmul.f32 %v1197_v8, %v1161_v3  ;;  %v1234_v8 = vld [vmem:[%s2206_s8 + $0x20] sm:$0xff] }
 0x486   :  { %1261 = vmatpush.msrb.mxu3 %v1234_v8 }
 0x487   :  { %1402 = vrcp.f32 %v1199_v38  ;;  %v1211_v21 = vand.u32 2147483648, %v1199_v38  ;;  %v1209_v27 = vand.u32 2147483647, %v1199_v38  ;;  %vm1205_vm13 = vweird.f32 %v1199_v38 }
 0x488   :  { %1262 = vmatpush.msrb.mxu3 %v1233_v28 }
 0x489   :  { %v1212_v26 = vor.u32 1.1754944e-38, %v1211_v21  ;;  %vm1210_vm0 = vcmp.eq.f32.partialorder %v1209_v27, 8.507059e+37  ;;  %v1230_v21 = vld [vmem:[%s2206_s8] sm:$0xff] }
 0x48c   :  { %v917_v16 = vpop.permute.xlu0 %916 }
 0x48d   :  { %v1403_v47 = vpop.eup %1402  ;;  %v952_v17 = vmul.f32 %v917_v16, %v798_v13  ;;  %v1232_v13 = vld [vmem:[%s2206_s8 + $0x10] sm:$0xff] }
 0x48e   :  { %v1201_v18 = vmul.f32 %v1403_v47, %v1199_v38  ;;  %vm1206_vm7 = vweird.f32 %v1403_v47  ;;  %1263 = vmatpush.msrb.mxu3 %v1232_v13 }
 0x48f   :  { %v1030_v20 = vsel %vm591_vm5, %v952_v17, -inf  ;;  %vm1207_vm15 = vmor %vm1205_vm13, %vm1206_vm7 }
 0x490   :  { %v1202_v31 = vsub.f32 1.0, %v1201_v18  ;;  %v1031_v6 = vmax.f32 %v1028_v56, %v1030_v20 }
 0x492   :  { %v1203_v22 = vmul.f32 %v1403_v47, %v1202_v31 }
 0x494   :  { %v912_v55 = vpop.permute.xlu0 %911  ;;  %v1204_v14 = vadd.f32 %v1403_v47, %v1203_v22 }
 0x495   :  { %v951_v19 = vmul.f32 %v912_v55, %v797_v23  ;;  %v1399_v23 = vld [vmem:[%s2205_s9] ss:$0 sm:$0xff] }
 0x496   :  { %v1208_v9 = vsel %vm1207_vm15, %v1403_v47, %v1204_v14  ;;  %v1231_v47 = vld [vmem:[%s2206_s8 + $0x8] sm:$0xff] }
 0x497   :  { %v1029_v12 = vsel %vm591_vm5, %v951_v19, -inf  ;;  %v1213_v35 = vsel %vm1210_vm0, %v1212_v26, %v1208_v9  ;;  %1264 = vmatpush.msrb.mxu3 %v1231_v47  ;;  %v1271_v26 = vmax.f32 %v1614_v59, 0.0 }
 0x498   :  { %v1032_v29 = vmax.f32 %v1031_v6, %v1029_v12  ;;  %v1214_v32 = vmul.f32 4.0, %v1213_v35 }
 0x499   :  { %1265 = vmatpush.msrb.mxu3 %v1230_v21 }
 0x49a   :  { %1217 = vperm.xlu1 %1395, %v1214_v32   ;;  %v1033_v0 = vrot.slane %v1032_v29, 4 }
 0x49c   :  { %v1034_v7 = vmax.f32 %v1032_v29, %v1033_v0 }
 0x49e   :  { %v1035_v38 = vrot.slane %v1034_v7, 2 }
 0x4a0   :  { %v1036_v15 = vmax.f32 %v1034_v7, %v1035_v38 }
 0x4a2   :  { %921 = vperm.xlu1 %1395, %v821_v41   ;;  %v1037_v18 = vrot.slane %v1036_v15, 1 }
 0x4a4   :  { %v1038_v20 = vmax.f32 %v1036_v15, %v1037_v18 }
 0x4aa   :  { %926 = vperm.xlu1 %1395, %v822_v40  }
 0x4dd   :  { %v1192_v42 = vpop.f32.mrf.mxu3 }
 0x50c   :  { %v1218_v45 = vpop.permute.xlu1 %1217 }
 0x50d   :  { %v1220_v48 = vmul.f32 %v1218_v45, %v1192_v42 }
 0x50f   :  { %1226 = vrot.lane.b32.xlu2 %v1220_v48, %s1406_s3 }
 0x514   :  { %v922_v57 = vpop.permute.xlu1 %921 }
 0x515   :  { %v953_v1 = vmul.f32 %v922_v57, %v799_v54 }
 0x517   :  { %v1039_v2 = vsel %vm591_vm5, %v953_v1, -inf }
 0x518   :  { %v1042_v3 = vmax.f32 %v1039_v2, %v1041_v60 }
 0x51c   :  { %v927_v44 = vpop.permute.xlu1 %926 }
 0x51d   :  { %v954_v30 = vmul.f32 %v927_v44, %v800_v5 }
 0x51f   :  { %v1040_v10 = vsel %vm591_vm5, %v954_v30, -inf }
 0x520   :  { %v1043_v61 = vmax.f32 %v1042_v3, %v1040_v10 }
 0x522   :  { %v1044_v11 = vrot.slane %v1043_v61, 4 }
 0x524   :  { %v1045_v16 = vmax.f32 %v1043_v61, %v1044_v11 }
 0x526   :  { %v1046_v17 = vrot.slane %v1045_v16, 2 }
 0x528   :  { %v1047_v4 = vmax.f32 %v1045_v16, %v1046_v17 }
 0x52a   :  { %v1048_v56 = vrot.slane %v1047_v4, 1 }
 0x52c   :  { %v1049_v31 = vmax.f32 %v1047_v4, %v1048_v56 }
 0x52e   :  { %v1223_v6 = vsel %vm1058_vm14, %v1049_v31, %v1038_v20  ;;  %vm1277_vm14 = vcmask 779264  }
 0x569   :  { %v1227_v22 = vpop.permute.xlu2 %1226 }
 0x56a   :  { %v1229_v27 = vsel %vm591_vm5, %v1223_v6, %v1227_v22 }
 0x56b   :  { %1266 = vmatmul.f32.vlgmr.msrb.gmra.mxu3 %v1229_v27 }
 0x5ee   :  { %v1267_v55 = vpop.f32.mrf.mxu3 }
 0x5ef   :  { %v1268_v14 = vadd.f32 %v1399_v23, %v1267_v55 }
 0x5f1   :  { %v1270_v19 = vmax.f32 %v1268_v14, 0.0 }
 0x5f3   :  { %1273 = vrot.lane.b32.xlu0 %v1270_v19, %s1407_s23 }
 0x665   :  { %v1274_v9 = vpop.permute.xlu0 %1273 }
 0x666   :  { %v1276_v12 = vsel %vm568_vm6, %v1271_v26, %v1274_v9 }
 0x667   :  { %1278 = vst.msk [vmem:[%s2207_s10] sm:$0x3] %vm1277_vm14, %v1276_v12 }

</bundles_post_ra>
